<compile_context>
chip_gen: v5e
topology: v5e:2x2
jax: 0.10.0
libtpu: 0.0.40
codegen_flags: <defaults>
</compile_context>

<pallas_src>
import functools

import jax
import jax.numpy as jnp
from jax.experimental import pallas as pl
from jax.experimental.pallas import tpu as pltpu

EPS = 1e-5  # torch.nn.GroupNorm default


# ---------------------------------------------------------------------------
# Kernel
# ---------------------------------------------------------------------------
def _groupnorm_silu(x, gamma, beta, mask_dg, mask_gd, groups):
    """GroupNorm (centered two-pass variance, eps=1e-5) + SiLU.

    Group statistics and the group->channel broadcast are MXU matmuls against
    exact 0/1 bf16 masks precomputed in the wrapper (no in-kernel iota rebuild,
    no lane-crossing reshape).  Centering x before the variance dot avoids the
    E[x^2]-mean^2 cancellation that bf16 MXU operands would amplify."""
    d = x.shape[-1]
    inv_gs = 1.0 / float(d // groups)
    mean_g = jnp.dot(x.astype(jnp.bfloat16), mask_dg,
                     preferred_element_type=jnp.float32) * inv_gs           # (TB, G)
    mean_c = jnp.dot(mean_g.astype(jnp.bfloat16), mask_gd,
                     preferred_element_type=jnp.float32)                    # (TB, D)
    xc = x - mean_c
    var_g = jnp.dot((xc * xc).astype(jnp.bfloat16), mask_dg,
                    preferred_element_type=jnp.float32) * inv_gs            # (TB, G)
    a_c = jnp.dot(jax.lax.rsqrt(var_g + EPS).astype(jnp.bfloat16), mask_gd,
                  preferred_element_type=jnp.float32)                       # (TB, D)
    xn = xc * a_c * gamma + beta
    return xn * jax.nn.sigmoid(xn)                                          # SiLU


def resnet_block_kernel(x_ref, t_ref,
                        mdg1_ref, mgd1_ref, mdg2_ref, mgd2_ref,
                        g1_ref, be1_ref, w1_ref, b1_ref,
                        wts_ref, bts_ref, wth_ref, bth_ref,
                        g2_ref, be2_ref, w2_ref, bout_ref,
                        *rest, groups, has_res, out_pad):
    if has_res:
        wr_ref, o_ref = rest
    else:
        (o_ref,) = rest

    x = x_ref[...].astype(jnp.float32)          # (TB, D)
    t = t_ref[...].astype(jnp.float32)          # (TB, T)

    # ---- block1 GroupNorm + SiLU (last GroupNorm consumer of x) ----
    h = _groupnorm_silu(x, g1_ref[...], be1_ref[...],
                        mdg1_ref[...], mgd1_ref[...], groups)

    # ---- residual: issued right after x's last norm use so the f32 (TB, D)
    #      live range ends early.  Identity path adds x exactly (no eye matmul).
    if has_res:
        res = jnp.dot(x.astype(jnp.bfloat16), wr_ref[...],
                      preferred_element_type=jnp.float32)                   # (TB, Dout_pad)
    else:
        res = x
        if out_pad > 0:
            res = jnp.concatenate(
                [res, jnp.zeros((x.shape[0], out_pad), dtype=res.dtype)], axis=-1)

    # ---- time MLP: SiLU -> Linear (weights pre-split into scale/shift halves
    #      so the kernel never slices along the lane dimension) ----
    t_act = (t * jax.nn.sigmoid(t)).astype(jnp.bfloat16)
    scale = jnp.dot(t_act, wts_ref[...],
                    preferred_element_type=jnp.float32) + bts_ref[...]      # (TB, Dout)
    shift = jnp.dot(t_act, wth_ref[...],
                    preferred_element_type=jnp.float32) + bth_ref[...]      # (TB, Dout)

    # ---- block1 projection + FiLM ----
    h1 = jnp.dot(h.astype(jnp.bfloat16), w1_ref[...],
                 preferred_element_type=jnp.float32) + b1_ref[...]          # (TB, Dout)
    h1 = h1 * (scale + 1.0) + shift

    # ---- block2: GroupNorm -> SiLU -> Linear (b2 + b_res fused into bout) ----
    h2 = _groupnorm_silu(h1, g2_ref[...], be2_ref[...],
                         mdg2_ref[...], mgd2_ref[...], groups)
    y2 = jnp.dot(h2.astype(jnp.bfloat16), w2_ref[...],
                 preferred_element_type=jnp.float32)                        # (TB, Dout_pad)

    o_ref[...] = (y2 + res + bout_ref[...]).astype(o_ref.dtype)


# ---------------------------------------------------------------------------
# One-time parameter preparation (hoisted out of the hot path)
# ---------------------------------------------------------------------------
def _group_masks(d, groups, dtype):
    gs = d // groups
    ch = jnp.arange(d, dtype=jnp.int32) // gs
    gr = jnp.arange(groups, dtype=jnp.int32)
    mask_dg = (ch[:, None] == gr[None, :]).astype(dtype)      # (d, groups)
    return mask_dg, mask_dg.T                                  # (d, g), (g, d)


def prepare_resnet_block_params(params, *, groups=8):
    """Pad / cast / split weights once; call this outside the training/inference loop."""
    f32, bf16 = jnp.float32, jnp.bfloat16
    D, Dout = params["w1"].shape
    T = params["w_t"].shape[0]
    assert D % groups == 0 and Dout % groups == 0, \
        "GroupNorm requires dim and dim_out to be multiples of `groups`"
    assert params["w_t"].shape[1] == 2 * Dout, \
        "shift_scale=True expects a (time_emb_dim, 2*dim_out) time-MLP weight"
    # NOTE: for real deployments D / Dout should be multiples of 128 (ideally 256
    # on v6e/v7x); tiny dims leave the 256-wide MXU mostly idle (launch/DMA bound).
    Dout_pad = ((Dout + 127) // 128) * 128
    pad = Dout_pad - Dout
    has_res = params.get("w_res") is not None

    mask_dg1, mask_gd1 = _group_masks(D, groups, bf16)
    mask_dg2, mask_gd2 = _group_masks(Dout, groups, bf16)

    w_t, b_t = params["w_t"], params["b_t"]
    bias_out = params["b2"] + (params["b_res"] if has_res else 0.0)   # fused final bias

    return {
        "mask_dg1": mask_dg1, "mask_gd1": mask_gd1,
        "mask_dg2": mask_dg2, "mask_gd2": mask_gd2,
        "gamma1": params["gamma1"].astype(f32).reshape(1, D),
        "beta1": params["beta1"].astype(f32).reshape(1, D),
        "w1": params["w1"].astype(bf16),
        "b1": params["b1"].astype(f32).reshape(1, Dout),
        "w_ts": w_t[:, :Dout].astype(bf16),                   # torch chunk: first half = scale
        "b_ts": b_t[:, :Dout].astype(f32).reshape(1, Dout),
        "w_th": w_t[:, Dout:].astype(bf16),
        "b_th": b_t[:, Dout:].astype(f32).reshape(1, Dout),
        "gamma2": params["gamma2"].astype(f32).reshape(1, Dout),
        "beta2": params["beta2"].astype(f32).reshape(1, Dout),
        "w2": jnp.pad(params["w2"], ((0, 0), (0, pad))).astype(bf16),
        "bias_out": jnp.pad(bias_out.reshape(1, Dout), ((0, 0), (0, pad))).astype(f32),
        "w_res": (jnp.pad(params["w_res"], ((0, 0), (0, pad))).astype(bf16)
                  if has_res else None),
        "meta": dict(D=D, Dout=Dout, Dout_pad=Dout_pad, T=T,
                     groups=groups, has_res=has_res),
    }


# ---------------------------------------------------------------------------
# Forward wrapper
# ---------------------------------------------------------------------------
@functools.lru_cache(maxsize=None)
def _vmem_limit_bytes():
    # Generation-aware VMEM budget: ~80% of per-core VMEM
    # (~51 MiB on v7x's 64 MiB/TC, ~102 MiB on v5e/v6e's 128 MiB).
    try:
        return int(pltpu.get_tpu_info().vmem_capacity_bytes * 0.8)
    except Exception:
        return 64 * 1024 * 1024


def _pick_batch_tile(B, batch_tile):
    # Keep the sublane (second-to-last) dim 8-aligned and aim for >= 2 grid steps
    # so dimension_semantics=("parallel",) can shard across v7x's two TensorCores.
    if B <= 16:
        return B
    tb = min(batch_tile, (B + 1) // 2)
    tb = max(8, (tb // 8) * 8)
    return min(tb, B)


def resnet_block_forward(x, time_emb, prepared, *, batch_tile=256):
    """Fused ResnetBlock forward (shift_scale=True, the module default)."""
    meta = prepared["meta"]
    D, Dout, Dout_pad, T = meta["D"], meta["Dout"], meta["Dout_pad"], meta["T"]
    groups, has_res = meta["groups"], meta["has_res"]
    out_pad = Dout_pad - Dout

    B = x.shape[0]
    assert x.shape[1] == D and time_emb.shape == (B, T)

    TB = _pick_batch_tile(B, batch_tile)
    grid = (pl.cdiv(B, TB),)
    G = groups

    const_shapes = [
        (D, G), (G, D), (Dout, G), (G, Dout),                    # group one-hot masks (bf16)
        (1, D), (1, D), (D, Dout), (1, Dout),                    # gamma1, beta1, w1, b1
        (T, Dout), (1, Dout), (T, Dout), (1, Dout),              # time-MLP scale/shift halves
        (1, Dout), (1, Dout), (Dout, Dout_pad), (1, Dout_pad),   # gamma2, beta2, w2, fused bias
    ]
    const_args = [
        prepared["mask_dg1"], prepared["mask_gd1"],
        prepared["mask_dg2"], prepared["mask_gd2"],
        prepared["gamma1"], prepared["beta1"], prepared["w1"], prepared["b1"],
        prepared["w_ts"], prepared["b_ts"], prepared["w_th"], prepared["b_th"],
        prepared["gamma2"], prepared["beta2"], prepared["w2"], prepared["bias_out"],
    ]
    if has_res:
        const_shapes.append((D, Dout_pad))
        const_args.append(prepared["w_res"])

    kernel = functools.partial(resnet_block_kernel, groups=groups,
                               has_res=has_res, out_pad=out_pad)

    def run(single_buffer_consts):
        if single_buffer_consts:
            # Constant-index weights never change block: single-buffer them so
            # their VMEM footprint is not doubled by the pipeline.
            def const(s):
                return pl.BlockSpec(s, lambda i: (0, 0), pipeline_mode=pl.Buffered(1))
        else:
            def const(s):
                return pl.BlockSpec(s, lambda i: (0, 0))
        row = lambda s: pl.BlockSpec(s, lambda i: (i, 0))
        return pl.pallas_call(
            kernel,
            out_shape=jax.ShapeDtypeStruct((B, Dout_pad), x.dtype),
            grid=grid,
            in_specs=[row((TB, D)), row((TB, T))] + [const(s) for s in const_shapes],
            out_specs=row((TB, Dout_pad)),
            compiler_params=pltpu.CompilerParams(
                dimension_semantics=("parallel",),      # megacore sharding on v7x
                vmem_limit_bytes=_vmem_limit_bytes(),
            ),
        )(x, time_emb, *const_args)

    try:
        out = run(single_buffer_consts=True)
    except Exception:
        # pipeline_mode=pl.Buffered(1) unsupported on this jax/libtpu -> default buffering.
        out = run(single_buffer_consts=False)

    return out[:, :Dout] if out_pad else out


# ---------------------------------------------------------------------------
# Plain-JAX reference (matches torch ResnetBlock semantics, f32)
# ---------------------------------------------------------------------------
def reference_forward(x, time_emb, params, *, groups):
    def silu(v):
        return v * jax.nn.sigmoid(v)

    def group_norm(v, gamma, beta):
        b, d = v.shape
        vg = v.reshape(b, groups, d // groups)
        mean = vg.mean(axis=-1, keepdims=True)
        var = ((vg - mean) ** 2).mean(axis=-1, keepdims=True)
        vn = ((vg - mean) / jnp.sqrt(var + EPS)).reshape(b, d)
        return vn * gamma + beta

    Dout = params["w1"].shape[1]
    temb = silu(time_emb) @ params["w_t"] + params["b_t"]
    scale, shift = temb[:, :Dout], temb[:, Dout:]

    h = silu(group_norm(x, params["gamma1"], params["beta1"])) @ params["w1"] + params["b1"]
    h = h * (scale + 1.0) + shift
    h = silu(group_norm(h, params["gamma2"], params["beta2"])) @ params["w2"] + params["b2"]

    if params.get("w_res") is not None:
        res = x @ params["w_res"] + params["b_res"]
    else:
        res = x
    return h + res


# ---------------------------------------------------------------------------
# Self-test
# ---------------------------------------------------------------------------
def _make_params(key, dim, dim_out, time_dim, *, identity_residual):
    ks = jax.random.split(key, 12)

    def linear(kw, kb, fi, fo):
        w = (jax.random.normal(kw, (fi, fo)) / jnp.sqrt(fi)).astype(jnp.float32)
        b = (0.1 * jax.random.normal(kb, (1, fo))).astype(jnp.float32)
        return w, b

    w_t, b_t = linear(ks[0], ks[1], time_dim, 2 * dim_out)
    w1, b1 = linear(ks[2], ks[3], dim, dim_out)
    w2, b2 = linear(ks[4], ks[5], dim_out, dim_out)
    params = {
        "gamma1": (1.0 + 0.1 * jax.random.normal(ks[6], (1, dim))).astype(jnp.float32),
        "beta1": (0.1 * jax.random.normal(ks[7], (1, dim))).astype(jnp.float32),
        "gamma2": (1.0 + 0.1 * jax.random.normal(ks[8], (1, dim_out))).astype(jnp.float32),
        "beta2": (0.1 * jax.random.normal(ks[9], (1, dim_out))).astype(jnp.float32),
        "w_t": w_t, "b_t": b_t, "w1": w1, "b1": b1, "w2": w2, "b2": b2,
    }
    if identity_residual:
        assert dim == dim_out
        params["w_res"], params["b_res"] = None, None
    else:
        w_res, b_res = linear(ks[10], ks[11], dim, dim_out)
        params["w_res"], params["b_res"] = w_res, b_res
    return params


if __name__ == "__main__":
    key = jax.random.PRNGKey(0)
    k1, k2, k3, k4, k5, k6 = jax.random.split(key, 6)

    # --- Test 1: projection residual (dim != dim_out), single grid step ---
    B, dim, dim_out, time_dim, groups = 8, 32, 64, 16, 8
    x = jax.random.normal(k1, (B, dim), dtype=jnp.float32)
    temb = jax.random.normal(k2, (B, time_dim), dtype=jnp.float32)
    params = _make_params(k3, dim, dim_out, time_dim, identity_residual=False)
    prepared = prepare_resnet_block_params(params, groups=groups)
    out = jax.block_until_ready(resnet_block_forward(x, temb, prepared))
    ref = reference_forward(x, temb, params, groups=groups)
    assert out.shape == (B, dim_out)
    err1 = float(jnp.max(jnp.abs(out - ref)))
    # bf16 MXU operands (f32 accumulation) -> looser tolerance than pure f32
    assert jnp.allclose(out, ref, atol=5e-2, rtol=5e-2), f"test1 mismatch, max|err|={err1}"

    # --- Test 2: identity residual (dim == dim_out), multi-step grid (megacore path) ---
    B2, dim2 = 24, 64
    x2 = jax.random.normal(k4, (B2, dim2), dtype=jnp.float32)
    temb2 = jax.random.normal(k5, (B2, time_dim), dtype=jnp.float32)
    params2 = _make_params(k6, dim2, dim2, time_dim, identity_residual=True)
    prepared2 = prepare_resnet_block_params(params2, groups=groups)
    out2 = jax.block_until_ready(resnet_block_forward(x2, temb2, prepared2, batch_tile=8))
    ref2 = reference_forward(x2, temb2, params2, groups=groups)
    assert out2.shape == (B2, dim2)
    err2 = float(jnp.max(jnp.abs(out2 - ref2)))
    assert jnp.allclose(out2, ref2, atol=5e-2, rtol=5e-2), f"test2 mismatch, max|err|={err2}"

    print("KERNEL_OK")
</pallas_src>

<mosaic_0001>
module attributes {stable_mosaic.version = 11 : i64} {
  func.func @resnet_block_kernel(%arg0: i32, %arg1: memref<8x32xf32, #tpu.memory_space<vmem>>, %arg2: memref<8x16xf32, #tpu.memory_space<vmem>>, %arg3: memref<32x8xbf16, #tpu.memory_space<vmem>>, %arg4: memref<8x32xbf16, #tpu.memory_space<vmem>>, %arg5: memref<64x8xbf16, #tpu.memory_space<vmem>>, %arg6: memref<8x64xbf16, #tpu.memory_space<vmem>>, %arg7: memref<1x32xf32, #tpu.memory_space<vmem>>, %arg8: memref<1x32xf32, #tpu.memory_space<vmem>>, %arg9: memref<32x64xbf16, #tpu.memory_space<vmem>>, %arg10: memref<1x64xf32, #tpu.memory_space<vmem>>, %arg11: memref<16x64xbf16, #tpu.memory_space<vmem>>, %arg12: memref<1x64xf32, #tpu.memory_space<vmem>>, %arg13: memref<16x64xbf16, #tpu.memory_space<vmem>>, %arg14: memref<1x64xf32, #tpu.memory_space<vmem>>, %arg15: memref<1x64xf32, #tpu.memory_space<vmem>>, %arg16: memref<1x64xf32, #tpu.memory_space<vmem>>, %arg17: memref<64x128xbf16, #tpu.memory_space<vmem>>, %arg18: memref<1x128xf32, #tpu.memory_space<vmem>>, %arg19: memref<32x128xbf16, #tpu.memory_space<vmem>>, %arg20: memref<8x128xf32, #tpu.memory_space<vmem>>) attributes {dimension_semantics = [#tpu.dimension_semantics<parallel>], iteration_bounds = array<i64: 1>, scalar_prefetch = 0 : i64, scratch_operands = 0 : i64, tpu.core_type = #tpu.core_type<tc>, window_params = [{transform_indices = @transform_0, window_bounds = array<i64: 8, 32>}, {transform_indices = @transform_1, window_bounds = array<i64: 8, 16>}, {pipeline_mode = #tpu.pipeline_mode<synchronous>, transform_indices = @transform_2, window_bounds = array<i64: 32, 8>}, {pipeline_mode = #tpu.pipeline_mode<synchronous>, transform_indices = @transform_3, window_bounds = array<i64: 8, 32>}, {pipeline_mode = #tpu.pipeline_mode<synchronous>, transform_indices = @transform_4, window_bounds = array<i64: 64, 8>}, {pipeline_mode = #tpu.pipeline_mode<synchronous>, transform_indices = @transform_5, window_bounds = array<i64: 8, 64>}, {pipeline_mode = #tpu.pipeline_mode<synchronous>, transform_indices = @transform_6, window_bounds = array<i64: 1, 32>}, {pipeline_mode = #tpu.pipeline_mode<synchronous>, transform_indices = @transform_7, window_bounds = array<i64: 1, 32>}, {pipeline_mode = #tpu.pipeline_mode<synchronous>, transform_indices = @transform_8, window_bounds = array<i64: 32, 64>}, {pipeline_mode = #tpu.pipeline_mode<synchronous>, transform_indices = @transform_9, window_bounds = array<i64: 1, 64>}, {pipeline_mode = #tpu.pipeline_mode<synchronous>, transform_indices = @transform_10, window_bounds = array<i64: 16, 64>}, {pipeline_mode = #tpu.pipeline_mode<synchronous>, transform_indices = @transform_11, window_bounds = array<i64: 1, 64>}, {pipeline_mode = #tpu.pipeline_mode<synchronous>, transform_indices = @transform_12, window_bounds = array<i64: 16, 64>}, {pipeline_mode = #tpu.pipeline_mode<synchronous>, transform_indices = @transform_13, window_bounds = array<i64: 1, 64>}, {pipeline_mode = #tpu.pipeline_mode<synchronous>, transform_indices = @transform_14, window_bounds = array<i64: 1, 64>}, {pipeline_mode = #tpu.pipeline_mode<synchronous>, transform_indices = @transform_15, window_bounds = array<i64: 1, 64>}, {pipeline_mode = #tpu.pipeline_mode<synchronous>, transform_indices = @transform_16, window_bounds = array<i64: 64, 128>}, {pipeline_mode = #tpu.pipeline_mode<synchronous>, transform_indices = @transform_17, window_bounds = array<i64: 1, 128>}, {pipeline_mode = #tpu.pipeline_mode<synchronous>, transform_indices = @transform_18, window_bounds = array<i64: 32, 128>}, {transform_indices = @transform_19, window_bounds = array<i64: 8, 128>}]} {
    %c0 = arith.constant 0 : index
    %c0_0 = arith.constant 0 : index
    %0 = vector.load %arg1[%c0, %c0_0] : memref<8x32xf32, #tpu.memory_space<vmem>>, vector<8x32xf32>
    %c0_1 = arith.constant 0 : index
    %c0_2 = arith.constant 0 : index
    %1 = vector.load %arg2[%c0_1, %c0_2] : memref<8x16xf32, #tpu.memory_space<vmem>>, vector<8x16xf32>
    %c0_3 = arith.constant 0 : index
    %c0_4 = arith.constant 0 : index
    %2 = vector.load %arg7[%c0_3, %c0_4] : memref<1x32xf32, #tpu.memory_space<vmem>>, vector<1x32xf32>
    %c0_5 = arith.constant 0 : index
    %c0_6 = arith.constant 0 : index
    %3 = vector.load %arg8[%c0_5, %c0_6] : memref<1x32xf32, #tpu.memory_space<vmem>>, vector<1x32xf32>
    %c0_7 = arith.constant 0 : index
    %c0_8 = arith.constant 0 : index
    %4 = vector.load %arg3[%c0_7, %c0_8] : memref<32x8xbf16, #tpu.memory_space<vmem>>, vector<32x8xbf16>
    %c0_9 = arith.constant 0 : index
    %c0_10 = arith.constant 0 : index
    %5 = vector.load %arg4[%c0_9, %c0_10] : memref<8x32xbf16, #tpu.memory_space<vmem>>, vector<8x32xbf16>
    %6 = arith.truncf %0 : vector<8x32xf32> to vector<8x32xbf16>
    %cst = arith.constant dense<0.000000e+00> : vector<8x8xf32>
    %7 = tpu.matmul %6, %4, %cst {dimension_numbers = #tpu.dot_dimension_numbers<[1], [0], [0], [1], [0, 0, 1, 1], [], []>} : vector<8x32xbf16>, vector<32x8xbf16>, vector<8x8xf32> -> vector<8x8xf32>
    %cst_11 = arith.constant 2.500000e-01 : f32
    %8 = vector.broadcast %cst_11 : f32 to vector<8x8xf32>
    %9 = arith.mulf %7, %8 : vector<8x8xf32>
    %10 = arith.truncf %9 : vector<8x8xf32> to vector<8x8xbf16>
    %cst_12 = arith.constant dense<0.000000e+00> : vector<8x32xf32>
    %11 = tpu.matmul %10, %5, %cst_12 {dimension_numbers = #tpu.dot_dimension_numbers<[1], [0], [0], [1], [0, 0, 1, 1], [], []>} : vector<8x8xbf16>, vector<8x32xbf16>, vector<8x32xf32> -> vector<8x32xf32>
    %12 = arith.subf %0, %11 : vector<8x32xf32>
    %13 = arith.mulf %12, %12 : vector<8x32xf32>
    %14 = arith.truncf %13 : vector<8x32xf32> to vector<8x32xbf16>
    %cst_13 = arith.constant dense<0.000000e+00> : vector<8x8xf32>
    %15 = tpu.matmul %14, %4, %cst_13 {dimension_numbers = #tpu.dot_dimension_numbers<[1], [0], [0], [1], [0, 0, 1, 1], [], []>} : vector<8x32xbf16>, vector<32x8xbf16>, vector<8x8xf32> -> vector<8x8xf32>
    %cst_14 = arith.constant 2.500000e-01 : f32
    %16 = vector.broadcast %cst_14 : f32 to vector<8x8xf32>
    %17 = arith.mulf %15, %16 : vector<8x8xf32>
    %cst_15 = arith.constant 9.99999974E-6 : f32
    %18 = vector.broadcast %cst_15 : f32 to vector<8x8xf32>
    %19 = arith.addf %17, %18 : vector<8x8xf32>
    %20 = math.rsqrt %19 : vector<8x8xf32>
    %21 = arith.truncf %20 : vector<8x8xf32> to vector<8x8xbf16>
    %cst_16 = arith.constant dense<0.000000e+00> : vector<8x32xf32>
    %22 = tpu.matmul %21, %5, %cst_16 {dimension_numbers = #tpu.dot_dimension_numbers<[1], [0], [0], [1], [0, 0, 1, 1], [], []>} : vector<8x8xbf16>, vector<8x32xbf16>, vector<8x32xf32> -> vector<8x32xf32>
    %23 = arith.mulf %12, %22 : vector<8x32xf32>
    %24 = vector.broadcast %2 : vector<1x32xf32> to vector<8x32xf32>
    %25 = arith.mulf %23, %24 : vector<8x32xf32>
    %26 = vector.broadcast %3 : vector<1x32xf32> to vector<8x32xf32>
    %27 = arith.addf %25, %26 : vector<8x32xf32>
    %28 = arith.negf %27 : vector<8x32xf32>
    %29 = math.exp %28 : vector<8x32xf32>
    %cst_17 = arith.constant 1.000000e+00 : f32
    %30 = vector.broadcast %cst_17 : f32 to vector<8x32xf32>
    %31 = arith.addf %30, %29 : vector<8x32xf32>
    %32 = arith.divf %30, %31 : vector<8x32xf32>
    %33 = arith.mulf %27, %32 : vector<8x32xf32>
    %34 = arith.truncf %0 : vector<8x32xf32> to vector<8x32xbf16>
    %c0_18 = arith.constant 0 : index
    %c0_19 = arith.constant 0 : index
    %35 = vector.load %arg19[%c0_18, %c0_19] : memref<32x128xbf16, #tpu.memory_space<vmem>>, vector<32x128xbf16>
    %cst_20 = arith.constant dense<0.000000e+00> : vector<8x128xf32>
    %36 = tpu.matmul %34, %35, %cst_20 {dimension_numbers = #tpu.dot_dimension_numbers<[1], [0], [0], [1], [0, 0, 1, 1], [], []>} : vector<8x32xbf16>, vector<32x128xbf16>, vector<8x128xf32> -> vector<8x128xf32>
    %37 = arith.negf %1 : vector<8x16xf32>
    %38 = math.exp %37 : vector<8x16xf32>
    %cst_21 = arith.constant 1.000000e+00 : f32
    %39 = vector.broadcast %cst_21 : f32 to vector<8x16xf32>
    %40 = arith.addf %39, %38 : vector<8x16xf32>
    %41 = arith.divf %39, %40 : vector<8x16xf32>
    %42 = arith.mulf %1, %41 : vector<8x16xf32>
    %43 = arith.truncf %42 : vector<8x16xf32> to vector<8x16xbf16>
    %c0_22 = arith.constant 0 : index
    %c0_23 = arith.constant 0 : index
    %44 = vector.load %arg11[%c0_22, %c0_23] : memref<16x64xbf16, #tpu.memory_space<vmem>>, vector<16x64xbf16>
    %cst_24 = arith.constant dense<0.000000e+00> : vector<8x64xf32>
    %45 = tpu.matmul %43, %44, %cst_24 {dimension_numbers = #tpu.dot_dimension_numbers<[1], [0], [0], [1], [0, 0, 1, 1], [], []>} : vector<8x16xbf16>, vector<16x64xbf16>, vector<8x64xf32> -> vector<8x64xf32>
    %c0_25 = arith.constant 0 : index
    %c0_26 = arith.constant 0 : index
    %46 = vector.load %arg12[%c0_25, %c0_26] : memref<1x64xf32, #tpu.memory_space<vmem>>, vector<1x64xf32>
    %47 = vector.broadcast %46 : vector<1x64xf32> to vector<8x64xf32>
    %48 = arith.addf %45, %47 : vector<8x64xf32>
    %c0_27 = arith.constant 0 : index
    %c0_28 = arith.constant 0 : index
    %49 = vector.load %arg13[%c0_27, %c0_28] : memref<16x64xbf16, #tpu.memory_space<vmem>>, vector<16x64xbf16>
    %cst_29 = arith.constant dense<0.000000e+00> : vector<8x64xf32>
    %50 = tpu.matmul %43, %49, %cst_29 {dimension_numbers = #tpu.dot_dimension_numbers<[1], [0], [0], [1], [0, 0, 1, 1], [], []>} : vector<8x16xbf16>, vector<16x64xbf16>, vector<8x64xf32> -> vector<8x64xf32>
    %c0_30 = arith.constant 0 : index
    %c0_31 = arith.constant 0 : index
    %51 = vector.load %arg14[%c0_30, %c0_31] : memref<1x64xf32, #tpu.memory_space<vmem>>, vector<1x64xf32>
    %52 = vector.broadcast %51 : vector<1x64xf32> to vector<8x64xf32>
    %53 = arith.addf %50, %52 : vector<8x64xf32>
    %54 = arith.truncf %33 : vector<8x32xf32> to vector<8x32xbf16>
    %c0_32 = arith.constant 0 : index
    %c0_33 = arith.constant 0 : index
    %55 = vector.load %arg9[%c0_32, %c0_33] : memref<32x64xbf16, #tpu.memory_space<vmem>>, vector<32x64xbf16>
    %cst_34 = arith.constant dense<0.000000e+00> : vector<8x64xf32>
    %56 = tpu.matmul %54, %55, %cst_34 {dimension_numbers = #tpu.dot_dimension_numbers<[1], [0], [0], [1], [0, 0, 1, 1], [], []>} : vector<8x32xbf16>, vector<32x64xbf16>, vector<8x64xf32> -> vector<8x64xf32>
    %c0_35 = arith.constant 0 : index
    %c0_36 = arith.constant 0 : index
    %57 = vector.load %arg10[%c0_35, %c0_36] : memref<1x64xf32, #tpu.memory_space<vmem>>, vector<1x64xf32>
    %58 = vector.broadcast %57 : vector<1x64xf32> to vector<8x64xf32>
    %59 = arith.addf %56, %58 : vector<8x64xf32>
    %cst_37 = arith.constant 1.000000e+00 : f32
    %60 = vector.broadcast %cst_37 : f32 to vector<8x64xf32>
    %61 = arith.addf %48, %60 : vector<8x64xf32>
    %62 = arith.mulf %59, %61 : vector<8x64xf32>
    %63 = arith.addf %62, %53 : vector<8x64xf32>
    %c0_38 = arith.constant 0 : index
    %c0_39 = arith.constant 0 : index
    %64 = vector.load %arg15[%c0_38, %c0_39] : memref<1x64xf32, #tpu.memory_space<vmem>>, vector<1x64xf32>
    %c0_40 = arith.constant 0 : index
    %c0_41 = arith.constant 0 : index
    %65 = vector.load %arg16[%c0_40, %c0_41] : memref<1x64xf32, #tpu.memory_space<vmem>>, vector<1x64xf32>
    %c0_42 = arith.constant 0 : index
    %c0_43 = arith.constant 0 : index
    %66 = vector.load %arg5[%c0_42, %c0_43] : memref<64x8xbf16, #tpu.memory_space<vmem>>, vector<64x8xbf16>
    %c0_44 = arith.constant 0 : index
    %c0_45 = arith.constant 0 : index
    %67 = vector.load %arg6[%c0_44, %c0_45] : memref<8x64xbf16, #tpu.memory_space<vmem>>, vector<8x64xbf16>
    %68 = arith.truncf %63 : vector<8x64xf32> to vector<8x64xbf16>
    %cst_46 = arith.constant dense<0.000000e+00> : vector<8x8xf32>
    %69 = tpu.matmul %68, %66, %cst_46 {dimension_numbers = #tpu.dot_dimension_numbers<[1], [0], [0], [1], [0, 0, 1, 1], [], []>} : vector<8x64xbf16>, vector<64x8xbf16>, vector<8x8xf32> -> vector<8x8xf32>
    %cst_47 = arith.constant 1.250000e-01 : f32
    %70 = vector.broadcast %cst_47 : f32 to vector<8x8xf32>
    %71 = arith.mulf %69, %70 : vector<8x8xf32>
    %72 = arith.truncf %71 : vector<8x8xf32> to vector<8x8xbf16>
    %cst_48 = arith.constant dense<0.000000e+00> : vector<8x64xf32>
    %73 = tpu.matmul %72, %67, %cst_48 {dimension_numbers = #tpu.dot_dimension_numbers<[1], [0], [0], [1], [0, 0, 1, 1], [], []>} : vector<8x8xbf16>, vector<8x64xbf16>, vector<8x64xf32> -> vector<8x64xf32>
    %74 = arith.subf %63, %73 : vector<8x64xf32>
    %75 = arith.mulf %74, %74 : vector<8x64xf32>
    %76 = arith.truncf %75 : vector<8x64xf32> to vector<8x64xbf16>
    %cst_49 = arith.constant dense<0.000000e+00> : vector<8x8xf32>
    %77 = tpu.matmul %76, %66, %cst_49 {dimension_numbers = #tpu.dot_dimension_numbers<[1], [0], [0], [1], [0, 0, 1, 1], [], []>} : vector<8x64xbf16>, vector<64x8xbf16>, vector<8x8xf32> -> vector<8x8xf32>
    %cst_50 = arith.constant 1.250000e-01 : f32
    %78 = vector.broadcast %cst_50 : f32 to vector<8x8xf32>
    %79 = arith.mulf %77, %78 : vector<8x8xf32>
    %cst_51 = arith.constant 9.99999974E-6 : f32
    %80 = vector.broadcast %cst_51 : f32 to vector<8x8xf32>
    %81 = arith.addf %79, %80 : vector<8x8xf32>
    %82 = math.rsqrt %81 : vector<8x8xf32>
    %83 = arith.truncf %82 : vector<8x8xf32> to vector<8x8xbf16>
    %cst_52 = arith.constant dense<0.000000e+00> : vector<8x64xf32>
    %84 = tpu.matmul %83, %67, %cst_52 {dimension_numbers = #tpu.dot_dimension_numbers<[1], [0], [0], [1], [0, 0, 1, 1], [], []>} : vector<8x8xbf16>, vector<8x64xbf16>, vector<8x64xf32> -> vector<8x64xf32>
    %85 = arith.mulf %74, %84 : vector<8x64xf32>
    %86 = vector.broadcast %64 : vector<1x64xf32> to vector<8x64xf32>
    %87 = arith.mulf %85, %86 : vector<8x64xf32>
    %88 = vector.broadcast %65 : vector<1x64xf32> to vector<8x64xf32>
    %89 = arith.addf %87, %88 : vector<8x64xf32>
    %90 = arith.negf %89 : vector<8x64xf32>
    %91 = math.exp %90 : vector<8x64xf32>
    %cst_53 = arith.constant 1.000000e+00 : f32
    %92 = vector.broadcast %cst_53 : f32 to vector<8x64xf32>
    %93 = arith.addf %92, %91 : vector<8x64xf32>
    %94 = arith.divf %92, %93 : vector<8x64xf32>
    %95 = arith.mulf %89, %94 : vector<8x64xf32>
    %96 = arith.truncf %95 : vector<8x64xf32> to vector<8x64xbf16>
    %c0_54 = arith.constant 0 : index
    %c0_55 = arith.constant 0 : index
    %97 = vector.load %arg17[%c0_54, %c0_55] : memref<64x128xbf16, #tpu.memory_space<vmem>>, vector<64x128xbf16>
    %cst_56 = arith.constant dense<0.000000e+00> : vector<8x128xf32>
    %98 = tpu.matmul %96, %97, %cst_56 {dimension_numbers = #tpu.dot_dimension_numbers<[1], [0], [0], [1], [0, 0, 1, 1], [], []>} : vector<8x64xbf16>, vector<64x128xbf16>, vector<8x128xf32> -> vector<8x128xf32>
    %99 = arith.addf %98, %36 : vector<8x128xf32>
    %c0_57 = arith.constant 0 : index
    %c0_58 = arith.constant 0 : index
    %100 = vector.load %arg18[%c0_57, %c0_58] : memref<1x128xf32, #tpu.memory_space<vmem>>, vector<1x128xf32>
    %101 = vector.broadcast %100 : vector<1x128xf32> to vector<8x128xf32>
    %102 = arith.addf %99, %101 : vector<8x128xf32>
    %c0_59 = arith.constant 0 : index
    %c0_60 = arith.constant 0 : index
    %103 = vector.load %arg20[%c0_59, %c0_60] : memref<8x128xf32, #tpu.memory_space<vmem>>, vector<8x128xf32>
    tpu.vector_store %arg20[%c0_59, %c0_60], %102 {strides = array<i32>} : memref<8x128xf32, #tpu.memory_space<vmem>>, vector<8x128xf32>,
    return
  }
  func.func @transform_0(%arg0: i32) -> (i32, i32) {
    %c0_i32 = arith.constant 0 : i32
    %c0_i32_0 = arith.constant 0 : i32
    return %arg0, %c0_i32 : i32, i32
  }
  func.func @transform_1(%arg0: i32) -> (i32, i32) {
    %c0_i32 = arith.constant 0 : i32
    %c0_i32_0 = arith.constant 0 : i32
    return %arg0, %c0_i32 : i32, i32
  }
  func.func @transform_2(%arg0: i32) -> (i32, i32) {
    %c0_i32 = arith.constant 0 : i32
    %c0_i32_0 = arith.constant 0 : i32
    %c0_i32_1 = arith.constant 0 : i32
    return %c0_i32, %c0_i32_0 : i32, i32
  }
  func.func @transform_3(%arg0: i32) -> (i32, i32) {
    %c0_i32 = arith.constant 0 : i32
    %c0_i32_0 = arith.constant 0 : i32
    %c0_i32_1 = arith.constant 0 : i32
    return %c0_i32, %c0_i32_0 : i32, i32
  }
  func.func @transform_4(%arg0: i32) -> (i32, i32) {
    %c0_i32 = arith.constant 0 : i32
    %c0_i32_0 = arith.constant 0 : i32
    %c0_i32_1 = arith.constant 0 : i32
    return %c0_i32, %c0_i32_0 : i32, i32
  }
  func.func @transform_5(%arg0: i32) -> (i32, i32) {
    %c0_i32 = arith.constant 0 : i32
    %c0_i32_0 = arith.constant 0 : i32
    %c0_i32_1 = arith.constant 0 : i32
    return %c0_i32, %c0_i32_0 : i32, i32
  }
  func.func @transform_6(%arg0: i32) -> (i32, i32) {
    %c0_i32 = arith.constant 0 : i32
    %c0_i32_0 = arith.constant 0 : i32
    %c0_i32_1 = arith.constant 0 : i32
    return %c0_i32, %c0_i32_0 : i32, i32
  }
  func.func @transform_7(%arg0: i32) -> (i32, i32) {
    %c0_i32 = arith.constant 0 : i32
    %c0_i32_0 = arith.constant 0 : i32
    %c0_i32_1 = arith.constant 0 : i32
    return %c0_i32, %c0_i32_0 : i32, i32
  }
  func.func @transform_8(%arg0: i32) -> (i32, i32) {
    %c0_i32 = arith.constant 0 : i32
    %c0_i32_0 = arith.constant 0 : i32
    %c0_i32_1 = arith.constant 0 : i32
    return %c0_i32, %c0_i32_0 : i32, i32
  }
  func.func @transform_9(%arg0: i32) -> (i32, i32) {
    %c0_i32 = arith.constant 0 : i32
    %c0_i32_0 = arith.constant 0 : i32
    %c0_i32_1 = arith.constant 0 : i32
    return %c0_i32, %c0_i32_0 : i32, i32
  }
  func.func @transform_10(%arg0: i32) -> (i32, i32) {
    %c0_i32 = arith.constant 0 : i32
    %c0_i32_0 = arith.constant 0 : i32
    %c0_i32_1 = arith.constant 0 : i32
    return %c0_i32, %c0_i32_0 : i32, i32
  }
  func.func @transform_11(%arg0: i32) -> (i32, i32) {
    %c0_i32 = arith.constant 0 : i32
    %c0_i32_0 = arith.constant 0 : i32
    %c0_i32_1 = arith.constant 0 : i32
    return %c0_i32, %c0_i32_0 : i32, i32
  }
  func.func @transform_12(%arg0: i32) -> (i32, i32) {
    %c0_i32 = arith.constant 0 : i32
    %c0_i32_0 = arith.constant 0 : i32
    %c0_i32_1 = arith.constant 0 : i32
    return %c0_i32, %c0_i32_0 : i32, i32
  }
  func.func @transform_13(%arg0: i32) -> (i32, i32) {
    %c0_i32 = arith.constant 0 : i32
    %c0_i32_0 = arith.constant 0 : i32
    %c0_i32_1 = arith.constant 0 : i32
    return %c0_i32, %c0_i32_0 : i32, i32
  }
  func.func @transform_14(%arg0: i32) -> (i32, i32) {
    %c0_i32 = arith.constant 0 : i32
    %c0_i32_0 = arith.constant 0 : i32
    %c0_i32_1 = arith.constant 0 : i32
    return %c0_i32, %c0_i32_0 : i32, i32
  }
  func.func @transform_15(%arg0: i32) -> (i32, i32) {
    %c0_i32 = arith.constant 0 : i32
    %c0_i32_0 = arith.constant 0 : i32
    %c0_i32_1 = arith.constant 0 : i32
    return %c0_i32, %c0_i32_0 : i32, i32
  }
  func.func @transform_16(%arg0: i32) -> (i32, i32) {
    %c0_i32 = arith.constant 0 : i32
    %c0_i32_0 = arith.constant 0 : i32
    %c0_i32_1 = arith.constant 0 : i32
    return %c0_i32, %c0_i32_0 : i32, i32
  }
  func.func @transform_17(%arg0: i32) -> (i32, i32) {
    %c0_i32 = arith.constant 0 : i32
    %c0_i32_0 = arith.constant 0 : i32
    %c0_i32_1 = arith.constant 0 : i32
    return %c0_i32, %c0_i32_0 : i32, i32
  }
  func.func @transform_18(%arg0: i32) -> (i32, i32) {
    %c0_i32 = arith.constant 0 : i32
    %c0_i32_0 = arith.constant 0 : i32
    %c0_i32_1 = arith.constant 0 : i32
    return %c0_i32, %c0_i32_0 : i32, i32
  }
  func.func @transform_19(%arg0: i32) -> (i32, i32) {
    %c0_i32 = arith.constant 0 : i32
    %c0_i32_0 = arith.constant 0 : i32
    return %arg0, %c0_i32 : i32, i32
  }
}

module attributes {stable_mosaic.version = 11 : i64} {
  func.func @resnet_block_kernel(%arg0: i32, %arg1: memref<8x32xf32, #tpu.memory_space<vmem>>, %arg2: memref<8x16xf32, #tpu.memory_space<vmem>>, %arg3: memref<32x8xbf16, #tpu.memory_space<vmem>>, %arg4: memref<8x32xbf16, #tpu.memory_space<vmem>>, %arg5: memref<64x8xbf16, #tpu.memory_space<vmem>>, %arg6: memref<8x64xbf16, #tpu.memory_space<vmem>>, %arg7: memref<1x32xf32, #tpu.memory_space<vmem>>, %arg8: memref<1x32xf32, #tpu.memory_space<vmem>>, %arg9: memref<32x64xbf16, #tpu.memory_space<vmem>>, %arg10: memref<1x64xf32, #tpu.memory_space<vmem>>, %arg11: memref<16x64xbf16, #tpu.memory_space<vmem>>, %arg12: memref<1x64xf32, #tpu.memory_space<vmem>>, %arg13: memref<16x64xbf16, #tpu.memory_space<vmem>>, %arg14: memref<1x64xf32, #tpu.memory_space<vmem>>, %arg15: memref<1x64xf32, #tpu.memory_space<vmem>>, %arg16: memref<1x64xf32, #tpu.memory_space<vmem>>, %arg17: memref<64x128xbf16, #tpu.memory_space<vmem>>, %arg18: memref<1x128xf32, #tpu.memory_space<vmem>>, %arg19: memref<32x128xbf16, #tpu.memory_space<vmem>>, %arg20: memref<8x128xf32, #tpu.memory_space<vmem>>) attributes {dimension_semantics = [#tpu.dimension_semantics<parallel>], iteration_bounds = array<i64: 1>, scalar_prefetch = 0 : i64, scratch_operands = 0 : i64, tpu.core_type = #tpu.core_type<tc>, window_params = [{transform_indices = @transform_0, window_bounds = array<i64: 8, 32>}, {transform_indices = @transform_1, window_bounds = array<i64: 8, 16>}, {pipeline_mode = #tpu.pipeline_mode<synchronous>, transform_indices = @transform_2, window_bounds = array<i64: 32, 8>}, {pipeline_mode = #tpu.pipeline_mode<synchronous>, transform_indices = @transform_3, window_bounds = array<i64: 8, 32>}, {pipeline_mode = #tpu.pipeline_mode<synchronous>, transform_indices = @transform_4, window_bounds = array<i64: 64, 8>}, {pipeline_mode = #tpu.pipeline_mode<synchronous>, transform_indices = @transform_5, window_bounds = array<i64: 8, 64>}, {pipeline_mode = #tpu.pipeline_mode<synchronous>, transform_indices = @transform_6, window_bounds = array<i64: 1, 32>}, {pipeline_mode = #tpu.pipeline_mode<synchronous>, transform_indices = @transform_7, window_bounds = array<i64: 1, 32>}, {pipeline_mode = #tpu.pipeline_mode<synchronous>, transform_indices = @transform_8, window_bounds = array<i64: 32, 64>}, {pipeline_mode = #tpu.pipeline_mode<synchronous>, transform_indices = @transform_9, window_bounds = array<i64: 1, 64>}, {pipeline_mode = #tpu.pipeline_mode<synchronous>, transform_indices = @transform_10, window_bounds = array<i64: 16, 64>}, {pipeline_mode = #tpu.pipeline_mode<synchronous>, transform_indices = @transform_11, window_bounds = array<i64: 1, 64>}, {pipeline_mode = #tpu.pipeline_mode<synchronous>, transform_indices = @transform_12, window_bounds = array<i64: 16, 64>}, {pipeline_mode = #tpu.pipeline_mode<synchronous>, transform_indices = @transform_13, window_bounds = array<i64: 1, 64>}, {pipeline_mode = #tpu.pipeline_mode<synchronous>, transform_indices = @transform_14, window_bounds = array<i64: 1, 64>}, {pipeline_mode = #tpu.pipeline_mode<synchronous>, transform_indices = @transform_15, window_bounds = array<i64: 1, 64>}, {pipeline_mode = #tpu.pipeline_mode<synchronous>, transform_indices = @transform_16, window_bounds = array<i64: 64, 128>}, {pipeline_mode = #tpu.pipeline_mode<synchronous>, transform_indices = @transform_17, window_bounds = array<i64: 1, 128>}, {pipeline_mode = #tpu.pipeline_mode<synchronous>, transform_indices = @transform_18, window_bounds = array<i64: 32, 128>}, {transform_indices = @transform_19, window_bounds = array<i64: 8, 128>}]} {
    %c0 = arith.constant 0 : index
    %c0_0 = arith.constant 0 : index
    %0 = vector.load %arg1[%c0, %c0_0] : memref<8x32xf32, #tpu.memory_space<vmem>>, vector<8x32xf32>
    %c0_1 = arith.constant 0 : index
    %c0_2 = arith.constant 0 : index
    %1 = vector.load %arg2[%c0_1, %c0_2] : memref<8x16xf32, #tpu.memory_space<vmem>>, vector<8x16xf32>
    %c0_3 = arith.constant 0 : index
    %c0_4 = arith.constant 0 : index
    %2 = vector.load %arg7[%c0_3, %c0_4] : memref<1x32xf32, #tpu.memory_space<vmem>>, vector<1x32xf32>
    %c0_5 = arith.constant 0 : index
    %c0_6 = arith.constant 0 : index
    %3 = vector.load %arg8[%c0_5, %c0_6] : memref<1x32xf32, #tpu.memory_space<vmem>>, vector<1x32xf32>
    %c0_7 = arith.constant 0 : index
    %c0_8 = arith.constant 0 : index
    %4 = vector.load %arg3[%c0_7, %c0_8] : memref<32x8xbf16, #tpu.memory_space<vmem>>, vector<32x8xbf16>
    %c0_9 = arith.constant 0 : index
    %c0_10 = arith.constant 0 : index
    %5 = vector.load %arg4[%c0_9, %c0_10] : memref<8x32xbf16, #tpu.memory_space<vmem>>, vector<8x32xbf16>
    %6 = arith.truncf %0 : vector<8x32xf32> to vector<8x32xbf16>
    %cst = arith.constant dense<0.000000e+00> : vector<8x8xf32>
    %7 = tpu.matmul %6, %4, %cst {dimension_numbers = #tpu.dot_dimension_numbers<[1], [0], [0], [1], [0, 0, 1, 1], [], []>} : vector<8x32xbf16>, vector<32x8xbf16>, vector<8x8xf32> -> vector<8x8xf32>
    %cst_11 = arith.constant 2.500000e-01 : f32
    %8 = vector.broadcast %cst_11 : f32 to vector<8x8xf32>
    %9 = arith.mulf %7, %8 : vector<8x8xf32>
    %10 = arith.truncf %9 : vector<8x8xf32> to vector<8x8xbf16>
    %cst_12 = arith.constant dense<0.000000e+00> : vector<8x32xf32>
    %11 = tpu.matmul %10, %5, %cst_12 {dimension_numbers = #tpu.dot_dimension_numbers<[1], [0], [0], [1], [0, 0, 1, 1], [], []>} : vector<8x8xbf16>, vector<8x32xbf16>, vector<8x32xf32> -> vector<8x32xf32>
    %12 = arith.subf %0, %11 : vector<8x32xf32>
    %13 = arith.mulf %12, %12 : vector<8x32xf32>
    %14 = arith.truncf %13 : vector<8x32xf32> to vector<8x32xbf16>
    %cst_13 = arith.constant dense<0.000000e+00> : vector<8x8xf32>
    %15 = tpu.matmul %14, %4, %cst_13 {dimension_numbers = #tpu.dot_dimension_numbers<[1], [0], [0], [1], [0, 0, 1, 1], [], []>} : vector<8x32xbf16>, vector<32x8xbf16>, vector<8x8xf32> -> vector<8x8xf32>
    %cst_14 = arith.constant 2.500000e-01 : f32
    %16 = vector.broadcast %cst_14 : f32 to vector<8x8xf32>
    %17 = arith.mulf %15, %16 : vector<8x8xf32>
    %cst_15 = arith.constant 9.99999974E-6 : f32
    %18 = vector.broadcast %cst_15 : f32 to vector<8x8xf32>
    %19 = arith.addf %17, %18 : vector<8x8xf32>
    %20 = math.rsqrt %19 : vector<8x8xf32>
    %21 = arith.truncf %20 : vector<8x8xf32> to vector<8x8xbf16>
    %cst_16 = arith.constant dense<0.000000e+00> : vector<8x32xf32>
    %22 = tpu.matmul %21, %5, %cst_16 {dimension_numbers = #tpu.dot_dimension_numbers<[1], [0], [0], [1], [0, 0, 1, 1], [], []>} : vector<8x8xbf16>, vector<8x32xbf16>, vector<8x32xf32> -> vector<8x32xf32>
    %23 = arith.mulf %12, %22 : vector<8x32xf32>
    %24 = vector.broadcast %2 : vector<1x32xf32> to vector<8x32xf32>
    %25 = arith.mulf %23, %24 : vector<8x32xf32>
    %26 = vector.broadcast %3 : vector<1x32xf32> to vector<8x32xf32>
    %27 = arith.addf %25, %26 : vector<8x32xf32>
    %28 = arith.negf %27 : vector<8x32xf32>
    %29 = math.exp %28 : vector<8x32xf32>
    %cst_17 = arith.constant 1.000000e+00 : f32
    %30 = vector.broadcast %cst_17 : f32 to vector<8x32xf32>
    %31 = arith.addf %30, %29 : vector<8x32xf32>
    %32 = arith.divf %30, %31 : vector<8x32xf32>
    %33 = arith.mulf %27, %32 : vector<8x32xf32>
    %34 = arith.truncf %0 : vector<8x32xf32> to vector<8x32xbf16>
    %c0_18 = arith.constant 0 : index
    %c0_19 = arith.constant 0 : index
    %35 = vector.load %arg19[%c0_18, %c0_19] : memref<32x128xbf16, #tpu.memory_space<vmem>>, vector<32x128xbf16>
    %cst_20 = arith.constant dense<0.000000e+00> : vector<8x128xf32>
    %36 = tpu.matmul %34, %35, %cst_20 {dimension_numbers = #tpu.dot_dimension_numbers<[1], [0], [0], [1], [0, 0, 1, 1], [], []>} : vector<8x32xbf16>, vector<32x128xbf16>, vector<8x128xf32> -> vector<8x128xf32>
    %37 = arith.negf %1 : vector<8x16xf32>
    %38 = math.exp %37 : vector<8x16xf32>
    %cst_21 = arith.constant 1.000000e+00 : f32
    %39 = vector.broadcast %cst_21 : f32 to vector<8x16xf32>
    %40 = arith.addf %39, %38 : vector<8x16xf32>
    %41 = arith.divf %39, %40 : vector<8x16xf32>
    %42 = arith.mulf %1, %41 : vector<8x16xf32>
    %43 = arith.truncf %42 : vector<8x16xf32> to vector<8x16xbf16>
    %c0_22 = arith.constant 0 : index
    %c0_23 = arith.constant 0 : index
    %44 = vector.load %arg11[%c0_22, %c0_23] : memref<16x64xbf16, #tpu.memory_space<vmem>>, vector<16x64xbf16>
    %cst_24 = arith.constant dense<0.000000e+00> : vector<8x64xf32>
    %45 = tpu.matmul %43, %44, %cst_24 {dimension_numbers = #tpu.dot_dimension_numbers<[1], [0], [0], [1], [0, 0, 1, 1], [], []>} : vector<8x16xbf16>, vector<16x64xbf16>, vector<8x64xf32> -> vector<8x64xf32>
    %c0_25 = arith.constant 0 : index
    %c0_26 = arith.constant 0 : index
    %46 = vector.load %arg12[%c0_25, %c0_26] : memref<1x64xf32, #tpu.memory_space<vmem>>, vector<1x64xf32>
    %47 = vector.broadcast %46 : vector<1x64xf32> to vector<8x64xf32>
    %48 = arith.addf %45, %47 : vector<8x64xf32>
    %c0_27 = arith.constant 0 : index
    %c0_28 = arith.constant 0 : index
    %49 = vector.load %arg13[%c0_27, %c0_28] : memref<16x64xbf16, #tpu.memory_space<vmem>>, vector<16x64xbf16>
    %cst_29 = arith.constant dense<0.000000e+00> : vector<8x64xf32>
    %50 = tpu.matmul %43, %49, %cst_29 {dimension_numbers = #tpu.dot_dimension_numbers<[1], [0], [0], [1], [0, 0, 1, 1], [], []>} : vector<8x16xbf16>, vector<16x64xbf16>, vector<8x64xf32> -> vector<8x64xf32>
    %c0_30 = arith.constant 0 : index
    %c0_31 = arith.constant 0 : index
    %51 = vector.load %arg14[%c0_30, %c0_31] : memref<1x64xf32, #tpu.memory_space<vmem>>, vector<1x64xf32>
    %52 = vector.broadcast %51 : vector<1x64xf32> to vector<8x64xf32>
    %53 = arith.addf %50, %52 : vector<8x64xf32>
    %54 = arith.truncf %33 : vector<8x32xf32> to vector<8x32xbf16>
    %c0_32 = arith.constant 0 : index
    %c0_33 = arith.constant 0 : index
    %55 = vector.load %arg9[%c0_32, %c0_33] : memref<32x64xbf16, #tpu.memory_space<vmem>>, vector<32x64xbf16>
    %cst_34 = arith.constant dense<0.000000e+00> : vector<8x64xf32>
    %56 = tpu.matmul %54, %55, %cst_34 {dimension_numbers = #tpu.dot_dimension_numbers<[1], [0], [0], [1], [0, 0, 1, 1], [], []>} : vector<8x32xbf16>, vector<32x64xbf16>, vector<8x64xf32> -> vector<8x64xf32>
    %c0_35 = arith.constant 0 : index
    %c0_36 = arith.constant 0 : index
    %57 = vector.load %arg10[%c0_35, %c0_36] : memref<1x64xf32, #tpu.memory_space<vmem>>, vector<1x64xf32>
    %58 = vector.broadcast %57 : vector<1x64xf32> to vector<8x64xf32>
    %59 = arith.addf %56, %58 : vector<8x64xf32>
    %cst_37 = arith.constant 1.000000e+00 : f32
    %60 = vector.broadcast %cst_37 : f32 to vector<8x64xf32>
    %61 = arith.addf %48, %60 : vector<8x64xf32>
    %62 = arith.mulf %59, %61 : vector<8x64xf32>
    %63 = arith.addf %62, %53 : vector<8x64xf32>
    %c0_38 = arith.constant 0 : index
    %c0_39 = arith.constant 0 : index
    %64 = vector.load %arg15[%c0_38, %c0_39] : memref<1x64xf32, #tpu.memory_space<vmem>>, vector<1x64xf32>
    %c0_40 = arith.constant 0 : index
    %c0_41 = arith.constant 0 : index
    %65 = vector.load %arg16[%c0_40, %c0_41] : memref<1x64xf32, #tpu.memory_space<vmem>>, vector<1x64xf32>
    %c0_42 = arith.constant 0 : index
    %c0_43 = arith.constant 0 : index
    %66 = vector.load %arg5[%c0_42, %c0_43] : memref<64x8xbf16, #tpu.memory_space<vmem>>, vector<64x8xbf16>
    %c0_44 = arith.constant 0 : index
    %c0_45 = arith.constant 0 : index
    %67 = vector.load %arg6[%c0_44, %c0_45] : memref<8x64xbf16, #tpu.memory_space<vmem>>, vector<8x64xbf16>
    %68 = arith.truncf %63 : vector<8x64xf32> to vector<8x64xbf16>
    %cst_46 = arith.constant dense<0.000000e+00> : vector<8x8xf32>
    %69 = tpu.matmul %68, %66, %cst_46 {dimension_numbers = #tpu.dot_dimension_numbers<[1], [0], [0], [1], [0, 0, 1, 1], [], []>} : vector<8x64xbf16>, vector<64x8xbf16>, vector<8x8xf32> -> vector<8x8xf32>
    %cst_47 = arith.constant 1.250000e-01 : f32
    %70 = vector.broadcast %cst_47 : f32 to vector<8x8xf32>
    %71 = arith.mulf %69, %70 : vector<8x8xf32>
    %72 = arith.truncf %71 : vector<8x8xf32> to vector<8x8xbf16>
    %cst_48 = arith.constant dense<0.000000e+00> : vector<8x64xf32>
    %73 = tpu.matmul %72, %67, %cst_48 {dimension_numbers = #tpu.dot_dimension_numbers<[1], [0], [0], [1], [0, 0, 1, 1], [], []>} : vector<8x8xbf16>, vector<8x64xbf16>, vector<8x64xf32> -> vector<8x64xf32>
    %74 = arith.subf %63, %73 : vector<8x64xf32>
    %75 = arith.mulf %74, %74 : vector<8x64xf32>
    %76 = arith.truncf %75 : vector<8x64xf32> to vector<8x64xbf16>
    %cst_49 = arith.constant dense<0.000000e+00> : vector<8x8xf32>
    %77 = tpu.matmul %76, %66, %cst_49 {dimension_numbers = #tpu.dot_dimension_numbers<[1], [0], [0], [1], [0, 0, 1, 1], [], []>} : vector<8x64xbf16>, vector<64x8xbf16>, vector<8x8xf32> -> vector<8x8xf32>
    %cst_50 = arith.constant 1.250000e-01 : f32
    %78 = vector.broadcast %cst_50 : f32 to vector<8x8xf32>
    %79 = arith.mulf %77, %78 : vector<8x8xf32>
    %cst_51 = arith.constant 9.99999974E-6 : f32
    %80 = vector.broadcast %cst_51 : f32 to vector<8x8xf32>
    %81 = arith.addf %79, %80 : vector<8x8xf32>
    %82 = math.rsqrt %81 : vector<8x8xf32>
    %83 = arith.truncf %82 : vector<8x8xf32> to vector<8x8xbf16>
    %cst_52 = arith.constant dense<0.000000e+00> : vector<8x64xf32>
    %84 = tpu.matmul %83, %67, %cst_52 {dimension_numbers = #tpu.dot_dimension_numbers<[1], [0], [0], [1], [0, 0, 1, 1], [], []>} : vector<8x8xbf16>, vector<8x64xbf16>, vector<8x64xf32> -> vector<8x64xf32>
    %85 = arith.mulf %74, %84 : vector<8x64xf32>
    %86 = vector.broadcast %64 : vector<1x64xf32> to vector<8x64xf32>
    %87 = arith.mulf %85, %86 : vector<8x64xf32>
    %88 = vector.broadcast %65 : vector<1x64xf32> to vector<8x64xf32>
    %89 = arith.addf %87, %88 : vector<8x64xf32>
    %90 = arith.negf %89 : vector<8x64xf32>
    %91 = math.exp %90 : vector<8x64xf32>
    %cst_53 = arith.constant 1.000000e+00 : f32
    %92 = vector.broadcast %cst_53 : f32 to vector<8x64xf32>
    %93 = arith.addf %92, %91 : vector<8x64xf32>
    %94 = arith.divf %92, %93 : vector<8x64xf32>
    %95 = arith.mulf %89, %94 : vector<8x64xf32>
    %96 = arith.truncf %95 : vector<8x64xf32> to vector<8x64xbf16>
    %c0_54 = arith.constant 0 : index
    %c0_55 = arith.constant 0 : index
    %97 = vector.load %arg17[%c0_54, %c0_55] : memref<64x128xbf16, #tpu.memory_space<vmem>>, vector<64x128xbf16>
    %cst_56 = arith.constant dense<0.000000e+00> : vector<8x128xf32>
    %98 = tpu.matmul %96, %97, %cst_56 {dimension_numbers = #tpu.dot_dimension_numbers<[1], [0], [0], [1], [0, 0, 1, 1], [], []>} : vector<8x64xbf16>, vector<64x128xbf16>, vector<8x128xf32> -> vector<8x128xf32>
    %99 = arith.addf %98, %36 : vector<8x128xf32>
    %c0_57 = arith.constant 0 : index
    %c0_58 = arith.constant 0 : index
    %100 = vector.load %arg18[%c0_57, %c0_58] : memref<1x128xf32, #tpu.memory_space<vmem>>, vector<1x128xf32>
    %101 = vector.broadcast %100 : vector<1x128xf32> to vector<8x128xf32>
    %102 = arith.addf %99, %101 : vector<8x128xf32>
    %c0_59 = arith.constant 0 : index
    %c0_60 = arith.constant 0 : index
    %103 = vector.load %arg20[%c0_59, %c0_60] : memref<8x128xf32, #tpu.memory_space<vmem>>, vector<8x128xf32>
    tpu.vector_store %arg20[%c0_59, %c0_60], %102 {strides = array<i32>} : memref<8x128xf32, #tpu.memory_space<vmem>>, vector<8x128xf32>,
    return
  }
  func.func @transform_0(%arg0: i32) -> (i32, i32) {
    %c0_i32 = arith.constant 0 : i32
    %c0_i32_0 = arith.constant 0 : i32
    return %arg0, %c0_i32 : i32, i32
  }
  func.func @transform_1(%arg0: i32) -> (i32, i32) {
    %c0_i32 = arith.constant 0 : i32
    %c0_i32_0 = arith.constant 0 : i32
    return %arg0, %c0_i32 : i32, i32
  }
  func.func @transform_2(%arg0: i32) -> (i32, i32) {
    %c0_i32 = arith.constant 0 : i32
    %c0_i32_0 = arith.constant 0 : i32
    %c0_i32_1 = arith.constant 0 : i32
    return %c0_i32, %c0_i32_0 : i32, i32
  }
  func.func @transform_3(%arg0: i32) -> (i32, i32) {
    %c0_i32 = arith.constant 0 : i32
    %c0_i32_0 = arith.constant 0 : i32
    %c0_i32_1 = arith.constant 0 : i32
    return %c0_i32, %c0_i32_0 : i32, i32
  }
  func.func @transform_4(%arg0: i32) -> (i32, i32) {
    %c0_i32 = arith.constant 0 : i32
    %c0_i32_0 = arith.constant 0 : i32
    %c0_i32_1 = arith.constant 0 : i32
    return %c0_i32, %c0_i32_0 : i32, i32
  }
  func.func @transform_5(%arg0: i32) -> (i32, i32) {
    %c0_i32 = arith.constant 0 : i32
    %c0_i32_0 = arith.constant 0 : i32
    %c0_i32_1 = arith.constant 0 : i32
    return %c0_i32, %c0_i32_0 : i32, i32
  }
  func.func @transform_6(%arg0: i32) -> (i32, i32) {
    %c0_i32 = arith.constant 0 : i32
    %c0_i32_0 = arith.constant 0 : i32
    %c0_i32_1 = arith.constant 0 : i32
    return %c0_i32, %c0_i32_0 : i32, i32
  }
  func.func @transform_7(%arg0: i32) -> (i32, i32) {
    %c0_i32 = arith.constant 0 : i32
    %c0_i32_0 = arith.constant 0 : i32
    %c0_i32_1 = arith.constant 0 : i32
    return %c0_i32, %c0_i32_0 : i32, i32
  }
  func.func @transform_8(%arg0: i32) -> (i32, i32) {
    %c0_i32 = arith.constant 0 : i32
    %c0_i32_0 = arith.constant 0 : i32
    %c0_i32_1 = arith.constant 0 : i32
    return %c0_i32, %c0_i32_0 : i32, i32
  }
  func.func @transform_9(%arg0: i32) -> (i32, i32) {
    %c0_i32 = arith.constant 0 : i32
    %c0_i32_0 = arith.constant 0 : i32
    %c0_i32_1 = arith.constant 0 : i32
    return %c0_i32, %c0_i32_0 : i32, i32
  }
  func.func @transform_10(%arg0: i32) -> (i32, i32) {
    %c0_i32 = arith.constant 0 : i32
    %c0_i32_0 = arith.constant 0 : i32
    %c0_i32_1 = arith.constant 0 : i32
    return %c0_i32, %c0_i32_0 : i32, i32
  }
  func.func @transform_11(%arg0: i32) -> (i32, i32) {
    %c0_i32 = arith.constant 0 : i32
    %c0_i32_0 = arith.constant 0 : i32
    %c0_i32_1 = arith.constant 0 : i32
    return %c0_i32, %c0_i32_0 : i32, i32
  }
  func.func @transform_12(%arg0: i32) -> (i32, i32) {
    %c0_i32 = arith.constant 0 : i32
    %c0_i32_0 = arith.constant 0 : i32
    %c0_i32_1 = arith.constant 0 : i32
    return %c0_i32, %c0_i32_0 : i32, i32
  }
  func.func @transform_13(%arg0: i32) -> (i32, i32) {
    %c0_i32 = arith.constant 0 : i32
    %c0_i32_0 = arith.constant 0 : i32
    %c0_i32_1 = arith.constant 0 : i32
    return %c0_i32, %c0_i32_0 : i32, i32
  }
  func.func @transform_14(%arg0: i32) -> (i32, i32) {
    %c0_i32 = arith.constant 0 : i32
    %c0_i32_0 = arith.constant 0 : i32
    %c0_i32_1 = arith.constant 0 : i32
    return %c0_i32, %c0_i32_0 : i32, i32
  }
  func.func @transform_15(%arg0: i32) -> (i32, i32) {
    %c0_i32 = arith.constant 0 : i32
    %c0_i32_0 = arith.constant 0 : i32
    %c0_i32_1 = arith.constant 0 : i32
    return %c0_i32, %c0_i32_0 : i32, i32
  }
  func.func @transform_16(%arg0: i32) -> (i32, i32) {
    %c0_i32 = arith.constant 0 : i32
    %c0_i32_0 = arith.constant 0 : i32
    %c0_i32_1 = arith.constant 0 : i32
    return %c0_i32, %c0_i32_0 : i32, i32
  }
  func.func @transform_17(%arg0: i32) -> (i32, i32) {
    %c0_i32 = arith.constant 0 : i32
    %c0_i32_0 = arith.constant 0 : i32
    %c0_i32_1 = arith.constant 0 : i32
    return %c0_i32, %c0_i32_0 : i32, i32
  }
  func.func @transform_18(%arg0: i32) -> (i32, i32) {
    %c0_i32 = arith.constant 0 : i32
    %c0_i32_0 = arith.constant 0 : i32
    %c0_i32_1 = arith.constant 0 : i32
    return %c0_i32, %c0_i32_0 : i32, i32
  }
  func.func @transform_19(%arg0: i32) -> (i32, i32) {
    %c0_i32 = arith.constant 0 : i32
    %c0_i32_0 = arith.constant 0 : i32
    return %arg0, %c0_i32 : i32, i32
  }
}

</mosaic_0001>

<bundles_post_ra>
// kernel: tpu_custom_call.1
= control target key start
LH: loop header
LB: loop body
LE: loop exit
PB: predicated region body
PF: predicated region fallthrough
CT: control target
= control target key end

     0   :  { %s1387_s0 = inlined_call_operand.hbm [shape: f32[8,32], index: 0, kind: input, shape index: {}]   ;;  %s1388_s1 = inlined_call_operand.hbm [shape: f32[8,16], index: 1, kind: input, shape index: {}]   ;;  %s1389_s2 = inlined_call_operand.vmem [shape: bf16[32,8], index: 2, kind: input, shape index: {}]   ;;  %s1390_s3 = inlined_call_operand.hbm [shape: bf16[8,32], index: 3, kind: input, shape index: {}]   ;;  %s1391_s4 = inlined_call_operand.vmem [shape: bf16[64,8], index: 4, kind: input, shape index: {}]   ;;  %s1392_s5 = inlined_call_operand.hbm [shape: bf16[8,64], index: 5, kind: input, shape index: {}]   ;;  %s1393_s6 = inlined_call_operand.hbm [shape: f32[1,32], index: 6, kind: input, shape index: {}]   ;;  %s1394_s7 = inlined_call_operand.hbm [shape: f32[1,32], index: 7, kind: input, shape index: {}]   ;;  %s1395_s8 = inlined_call_operand.vmem [shape: bf16[32,64], index: 8, kind: input, shape index: {}]   ;;  %s1396_s9 = inlined_call_operand.hbm [shape: f32[1,64], index: 9, kind: input, shape index: {}]   ;;  %s1397_s10 = inlined_call_operand.hbm [shape: bf16[16,64], index: 10, kind: input, shape index: {}]   ;;  %s1398_s11 = inlined_call_operand.hbm [shape: f32[1,64], index: 11, kind: input, shape index: {}]   ;;  %s1399_s12 = inlined_call_operand.hbm [shape: bf16[16,64], index: 12, kind: input, shape index: {}]   ;;  %s1400_s13 = inlined_call_operand.hbm [shape: f32[1,64], index: 13, kind: input, shape index: {}]   ;;  %s1401_s14 = inlined_call_operand.vmem [shape: f32[1,64], index: 14, kind: input, shape index: {}]   ;;  %s1402_s15 = inlined_call_operand.vmem [shape: f32[1,64], index: 15, kind: input, shape index: {}]   ;;  %s1403_s16 = inlined_call_operand.vmem [shape: bf16[64,128], index: 16, kind: input, shape index: {}]   ;;  %s1404_s17 = inlined_call_operand.vmem [shape: f32[1,128], index: 17, kind: input, shape index: {}]   ;;  %s1405_s18 = inlined_call_operand.vmem [shape: bf16[32,128], index: 18, kind: input, shape index: {}]   ;;  %s1406_s19 = inlined_call_operand.hbm [shape: f32[8,128], index: 19, kind: output, shape index: {}]  }
   0x1   :  { %1408 = sst [smem:[#allocation28_spill]] %s1387_s0 }
   0x2   :  { %1409 = sst [smem:[#allocation29_spill]] %s1388_s1 }
   0x3   :  { %1410 = sst [smem:[#allocation30_spill]] %s1389_s2 }
   0x4   :  { %1411 = sst [smem:[#allocation31_spill]] %s1390_s3 }
   0x5   :  { %24 = vsyncpa [#allocation3], 0 }
   0x6   :  { %25 = vsyncpa [#allocation6], 0 }
   0x7   :  { %26 = vsyncpa [#allocation9], 0 }
   0x8   :  { %27 = vsyncpa [#allocation12], 0 }
   0x9   :  { %28 = vsyncpa [#allocation15], 0 }
   0xa   :  { %29 = vsyncpa [#allocation18], 0  ;;  %s1412_s20 = sld [smem:[#allocation29_spill]] }
  0x10   :  { %s47_s21 = sshll.u32 %s1412_s20, 4  ;;  %s48_s21 = int_to_ptr.hbm [resolvable:$true] %s47_s21 }
  0x11   :  { %30 = vsyncpa [#allocation4], 0  ;;  %s1164_s1 = smov [#allocation5]   ;;  %s73_s24 = sshll.u32 %s1392_s5, 4  ;;  %s74_s24 = int_to_ptr.hbm [resolvable:$true] %s73_s24 }
  0x12   :  { %s49_s22 = sshll.u32 %s1164_s1, 4  ;;  %s1165_s25 = smov [#allocation8]   ;;  %s50_s22 = int_to_ptr.vmem [resolvable:$true] %s49_s22 }
  0x13   :  { %52 = dma.hbm_to_vmem [thread:$0]  %s48_s21, 128, %s50_s22, [#allocation6]  }
  0x14   :  { %s75_s3 = sshll.u32 %s1165_s25, 4  ;;  %s95_s28 = sshll.u32 %s1394_s7, 4  ;;  %s76_s3 = int_to_ptr.vmem [resolvable:$true] %s75_s3  ;;  %s96_s28 = int_to_ptr.hbm [resolvable:$true] %s95_s28 }
  0x15   :  { %78 = dma.hbm_to_vmem [thread:$0]  %s74_s24, 64, %s76_s3, [#allocation9]  }
  0x16   :  { %s118_s30 = sshll.u32 %s1397_s10, 4  ;;  %s1166_s20 = smov [#allocation11]   ;;  %s119_s30 = int_to_ptr.hbm [resolvable:$true] %s118_s30 }
  0x17   :  { %s97_s1 = sshll.u32 %s1166_s20, 4  ;;  %s1167_s5 = smov [#allocation14]   ;;  %s98_s1 = int_to_ptr.vmem [resolvable:$true] %s97_s1 }
  0x18   :  { %100 = dma.hbm_to_vmem [thread:$0]  %s96_s28, 16, %s98_s1, [#allocation12]  }
  0x19   :  { %s120_s21 = sshll.u32 %s1167_s5, 4  ;;  %s1168_s22 = smov 64   ;;  %s121_s21 = int_to_ptr.vmem [resolvable:$true] %s120_s21 }
  0x1a   :  { %s1169_s2 = smov 4   ;;  %s142_s25 = sshll.u32 %s1399_s12, 4  ;;  %s143_s25 = int_to_ptr.hbm [resolvable:$true] %s142_s25 }
  0x1b   :  { %126 = dma.hbm_to_vmem [thread:$0]  %s119_s30, 128, %s121_s21, [#allocation15], %s1168_s22, %s1168_s22, %s1169_s2  }
  0x1c   :  { %s1170_s24 = smov [#allocation17]   ;;  %s1413_s27 = sld [smem:[#allocation28_spill]] }
  0x1d   :  { %s144_s3 = sshll.u32 %s1170_s24, 4  ;;  %s1171_s28 = smov [#allocation2]   ;;  %s145_s3 = int_to_ptr.vmem [resolvable:$true] %s144_s3 }
  0x1e   :  { %150 = dma.hbm_to_vmem [thread:$0]  %s143_s25, 128, %s145_s3, [#allocation18], %s1168_s22, %s1168_s22, %s1169_s2  }
  0x1f   :  { %s38_s0 = sshll.u32 %s1171_s28, 4  ;;  %s1414_s5 = sld [smem:[#allocation31_spill]]  ;;  %s39_s0 = int_to_ptr.vmem [resolvable:$true] %s38_s0 }
  0x20   :  { %s84_s23 = sshll.u32 %s1393_s6, 4  ;;  %s1172_s7 = smov [#allocation7]   ;;  %s85_s23 = int_to_ptr.hbm [resolvable:$true] %s84_s23 }
  0x21   :  { %s62_s24 = sshll.u32 %s1172_s7, 4  ;;  %s1173_s22 = smov [#allocation10]   ;;  %s63_s24 = int_to_ptr.vmem [resolvable:$true] %s62_s24 }
  0x22   :  { %s36_s29 = sshll.u32 %s1413_s27, 4  ;;  %s86_s2 = sshll.u32 %s1173_s22, 4  ;;  %s37_s29 = int_to_ptr.hbm [resolvable:$true] %s36_s29  ;;  %s87_s2 = int_to_ptr.vmem [resolvable:$true] %s86_s2 }
  0x23   :  { %41 = dma.hbm_to_vmem [thread:$0]  %s37_s29, 128, %s39_s0, [#allocation3]  }
  0x24   :  { %s108_s10 = sshll.u32 %s1396_s9, 4  ;;  %s132_s29 = sshll.u32 %s1398_s11, 4  ;;  %s109_s10 = int_to_ptr.hbm [resolvable:$true] %s108_s10  ;;  %s133_s29 = int_to_ptr.hbm [resolvable:$true] %s132_s29 }
  0x25   :  { %s60_s30 = sshll.u32 %s1414_s5, 4  ;;  %s1174_s28 = smov [#allocation13]   ;;  %s61_s30 = int_to_ptr.hbm [resolvable:$true] %s60_s30 }
  0x26   :  { %65 = dma.hbm_to_vmem [thread:$0]  %s61_s30, 64, %s63_s24, [#allocation6]  }
  0x27   :  { %89 = dma.hbm_to_vmem [thread:$0]  %s85_s23, 16, %s87_s2, [#allocation9]  }
  0x28   :  { %s110_s6 = sshll.u32 %s1174_s28, 4  ;;  %s1175_s0 = smov [#allocation16]   ;;  %s111_s6 = int_to_ptr.vmem [resolvable:$true] %s110_s6 }
  0x29   :  { %113 = dma.hbm_to_vmem [thread:$0]  %s109_s10, 16, %s111_s6, [#allocation12]  }
  0x2a   :  { %s134_s20 = sshll.u32 %s1175_s0, 4  ;;  %s156_s30 = sshll.u32 %s1400_s13, 4  ;;  %s135_s20 = int_to_ptr.vmem [resolvable:$true] %s134_s20  ;;  %s157_s30 = int_to_ptr.hbm [resolvable:$true] %s156_s30 }
  0x2b   :  { %137 = dma.hbm_to_vmem [thread:$0]  %s133_s29, 16, %s135_s20, [#allocation15]  }
  0x2c   :  { %s1176_s9 = smov [#allocation19]  }
  0x2d   :  { %s158_s12 = sshll.u32 %s1176_s9, 4  ;;  %s159_s12 = int_to_ptr.vmem [resolvable:$true] %s158_s12 }
  0x2e   :  { %161 = dma.hbm_to_vmem [thread:$0]  %s157_s30, 16, %s159_s12, [#allocation18]  }
  0x2f   :  { %1150 = dma.done.wait [#allocation3], 128  }
  0x30   :  { %1151 = vsyncadd [#allocation3], 4294967168 }
  0x31   :  { %1152 = dma.done.wait [#allocation6], 192  }
  0x32   :  { %1153 = vsyncadd [#allocation6], 4294967104 }
  0x33   :  { %1154 = dma.done.wait [#allocation9], 80  }
  0x34   :  { %1155 = vsyncadd [#allocation9], 4294967216 }
  0x35   :  { %1156 = dma.done.wait [#allocation12], 32  }
  0x36   :  { %1157 = vsyncadd [#allocation12], 4294967264 }
  0x37   :  { %1158 = dma.done.wait [#allocation15], 144  }
  0x38   :  { %1159 = vsyncadd [#allocation15], 4294967152 }
  0x39   :  { %1160 = dma.done.wait [#allocation18], 144  }
  0x3a   :  { %1161 = vsyncadd [#allocation18], 4294967152  ;;  %s1415_s21 = sld [smem:[#allocation30_spill]]  ;;  %v217_v2 = vld [vmem:[#allocation2] sm:$0xff]  ;;  %vm239_vm0 = vcmask 261120   ;;  %vm262_vm1 = vcmask 1043456  }
  0x3b   :  { %v1317_v3 = vpack.c.bf16 %v217_v2, %v217_v2  ;;  %v225_v4 = vld [vmem:[#allocation7] sm:$0xf]  ;;  %vm258_vm2 = vcmask 64512   ;;  %v218_v27 = vld [vmem:[#allocation5] sm:$0xff]  ;;  %v510_v36 = vld [vmem:[#allocation8] sm:$0xf] }
  0x3c   :  { %v264_v5 = vsel %vm262_vm1, %v225_v4, 0  ;;  %v750_v28 = vmul.f32 -1.442695, %v218_v27  ;;  %v559_v41 = vsel %vm262_vm1, %v510_v36, 0  ;;  %v812_v42 = vld [vmem:[#allocation14] sm:$0xff]  ;;  %vm418_vm10 = vcmask 130048  }
  0x3d   :  { %273 = vmatpush.bf16.msra.mxu1 %v264_v5  ;;  %321 = vmatpush.bf16.msra.mxu3 %v264_v5  ;;  %v815_v46 = vld [vmem:[%s1395_s8 + $0x8] sm:$0xff]  ;;  %v838_v47 = vld [vmem:[#allocation10] ss:$0 sm:$0xff]  ;;  %v839_v50 = vld [vmem:[#allocation11] ss:$0 sm:$0xff]  ;;  %vm536_vm15 = vcmask 523264  }
  0x3e   :  { %v813_v51 = vld [vmem:[#allocation17] sm:$0xff]  ;;  %v814_v52 = vld [vmem:[%s1395_s8] sm:$0xff]  ;;  %s713_s10 = sshll.u32 %s1406_s19, 4  ;;  %s714_s10 = int_to_ptr.hbm [resolvable:$true] %s713_s10 }
  0x3f   :  { %v811_v56 = vld [vmem:[%s1405_s18 + $0x8] sm:$0xff]  ;;  %v810_v58 = vld [vmem:[%s1405_s18] sm:$0xff] }
  0x40   :  { %v809_v0 = vld [vmem:[%s1415_s21 + $0x8] sm:$0xff]  ;;  %v808_v1 = vld [vmem:[%s1415_s21] sm:$0xff] }
  0x41   :  { %249 = vmatpush.bf16.msra.mxu0 %v809_v0  ;;  %291 = vmatpush.bf16.msra.mxu2 %v809_v0 }
  0x42   :  { %429 = vmatpush.bf16.msrb.mxu3 %v812_v42  ;;  %378 = vmatpush.bf16.msrb.mxu1 %v811_v56 }
  0x45   :  { %250 = vmatpush.bf16.msra.mxu0 %v808_v1  ;;  %292 = vmatpush.bf16.msra.mxu2 %v808_v1 }
  0x46   :  { %379 = vmatpush.bf16.msrb.mxu1 %v810_v58  ;;  %v844_v58 = vld [vmem:[%s1402_s15] ss:$0 sm:$0xff] }
  0x48   :  { %736 = vmatmul.msk.bf16.vlgmr.msra.gmra.mxu0 %vm239_vm0, %v1317_v3 }
  0x49   :  { %490 = vmatpush.bf16.msrb.mxu2 %v815_v46  ;;  %454 = vmatpush.bf16.msrb.mxu0 %v813_v51 }
  0x4d   :  { %491 = vmatpush.bf16.msrb.mxu2 %v814_v52  ;;  %v823_v52 = vld [vmem:[%s1403_s16 + $0x18] sm:$0xff] }
  0xc5   :  { %v252_v6 = vpop.f32.mrf.mxu0 }
  0xc6   :  { %v256_v7 = vmul.f32 0.25, %v252_v6 }
  0xc8   :  { %v257_v8 = vpack.c.bf16 %v256_v7, %v256_v7 }
  0xca   :  { %737 = vmatmul.msk.bf16.vlgmr.msra.gmra.mxu1 %vm258_vm2, %v257_v8 }
  0xcd   :  { %v254_v9 = vpop.f32.mrf.mxu0 }
  0xda   :  { %749 = vmatmul.msk.bf16.vlgmr.msrb.gmra.mxu1 %vm239_vm0, %v1317_v3  ;;  %v819_v3 = vld [vmem:[%s1391_s4 + $0x18] sm:$0xff] }
  0xdb   :  { %544 = vmatpush.bf16.msra.mxu1 %v819_v3  ;;  %584 = vmatpush.bf16.msra.mxu0 %v819_v3 }
 0x147   :  { %v275_v10 = vpop.f32.mrf.mxu1 }
 0x148   :  { %v279_v11 = vsub.f32 %v217_v2, %v275_v10  ;;  %v818_v10 = vld [vmem:[%s1391_s4 + $0x10] sm:$0xff] }
 0x149   :  { %545 = vmatpush.bf16.msra.mxu1 %v818_v10  ;;  %585 = vmatpush.bf16.msra.mxu0 %v818_v10 }
 0x14a   :  { %v280_v12 = vmul.f32 %v279_v11, %v279_v11 }
 0x14c   :  { %v281_v13 = vpack.c.bf16 %v280_v12, %v280_v12 }
 0x14e   :  { %738 = vmatmul.msk.bf16.vlgmr.msra.gmra.mxu2 %vm239_vm0, %v281_v13 }
 0x14f   :  { %v277_v14 = vpop.f32.mrf.mxu1  ;;  %616 = vmatpush.bf16.msra.mxu2 %v559_v41 }
 0x150   :  { %v817_v14 = vld [vmem:[%s1391_s4 + $0x8] sm:$0xff] }
 0x151   :  { %546 = vmatpush.bf16.msra.mxu1 %v817_v14  ;;  %586 = vmatpush.bf16.msra.mxu0 %v817_v14  ;;  %v845_v14 = vld [vmem:[%s1404_s17] ss:$0 sm:$0xff] }
 0x1d1   :  { %v294_v15 = vpop.f32.mrf.mxu2 }
 0x1d2   :  { %v298_v16 = vmul.f32 0.25, %v294_v15 }
 0x1d4   :  { %v299_v17 = vadd.f32 1e-05, %v298_v16  ;;  %v816_v16 = vld [vmem:[%s1391_s4] sm:$0xff] }
 0x1d5   :  { %547 = vmatpush.bf16.msra.mxu1 %v816_v16  ;;  %587 = vmatpush.bf16.msra.mxu0 %v816_v16 }
 0x1d6   :  { %846 = vrsqrt.f32 %v299_v17  ;;  %vm306_vm4 = vweird.f32 %v299_v17 }
 0x1d7   :  { %848 = vpow2.f32 %v750_v28 }
 0x1d9   :  { %v296_v18 = vpop.f32.mrf.mxu2  ;;  %691 = vmatpush.bf16.msrb.mxu1 %v823_v52 }
 0x1dc   :  { %v847_v19 = vpop.eup %846 }
 0x1dd   :  { %v301_v20 = vmul.f32 %v847_v19, %v299_v17  ;;  %vm307_vm3 = vweird.f32 %v847_v19  ;;  %v849_v29 = vpop.eup %848  ;;  %v1355_v17 = vpop.f32.mrf.mxu1 }
 0x1de   :  { %vm308_vm5 = vmor %vm306_vm4, %vm307_vm3  ;;  %v388_v30 = vadd.f32 1.0, %v849_v29 }
 0x1df   :  { %v302_v21 = vmul.f32 %v847_v19, %v301_v20 }
 0x1e0   :  { %850 = vrcp.f32 %v388_v30  ;;  %v400_v35 = vand.u32 2147483648, %v388_v30  ;;  %vm394_vm6 = vweird.f32 %v388_v30  ;;  %v398_v38 = vand.u32 2147483647, %v388_v30 }
 0x1e1   :  { %v303_v22 = vmul.f32 0.5, %v302_v21  ;;  %v841_v21 = vld [vmem:[#allocation19] ss:$0 sm:$0xff] }
 0x1e2   :  { %v401_v39 = vor.u32 1.1754944e-38, %v400_v35  ;;  %vm399_vm9 = vcmp.eq.f32.partialorder %v398_v38, 8.507059e+37 }
 0x1e3   :  { %v304_v23 = vsub.f32 1.5, %v303_v22  ;;  %v842_v22 = vld [vmem:[#allocation13] ss:$0 sm:$0xff] }
 0x1e5   :  { %v305_v24 = vmul.f32 %v847_v19, %v304_v23  ;;  %v383_v18 = vpop.f32.mrf.mxu1 }
 0x1e6   :  { %v851_v31 = vpop.eup %850 }
 0x1e7   :  { %v309_v25 = vsel %vm308_vm5, %v847_v19, %v305_v24  ;;  %v390_v32 = vmul.f32 %v851_v31, %v388_v30  ;;  %vm395_vm7 = vweird.f32 %v851_v31  ;;  %v840_v19 = vld [vmem:[#allocation16] ss:$0 sm:$0xff] }
 0x1e8   :  { %v310_v26 = vpack.c.bf16 %v309_v25, %v309_v25  ;;  %vm396_vm8 = vmor %vm394_vm6, %vm395_vm7 }
 0x1e9   :  { %v391_v33 = vsub.f32 1.0, %v390_v32 }
 0x1ea   :  { %739 = vmatmul.msk.bf16.vlgmr.msra.gmra.mxu3 %vm258_vm2, %v310_v26 }
 0x1eb   :  { %v392_v34 = vmul.f32 %v851_v31, %v391_v33  ;;  %568 = vmatpush.bf16.msra.mxu3 %v559_v41 }
 0x1ed   :  { %v393_v37 = vadd.f32 %v851_v31, %v392_v34 }
 0x1ef   :  { %v397_v40 = vsel %vm396_vm8, %v851_v31, %v393_v37 }
 0x1f0   :  { %v402_v43 = vsel %vm399_vm9, %v401_v39, %v397_v40 }
 0x1f1   :  { %v404_v44 = vmul.f32 %v402_v43, %v218_v27 }
 0x1f3   :  { %v405_v45 = vpack.c.bf16 %v404_v44, %v404_v44 }
 0x1f5   :  { %760 = vmatmul.msk.bf16.vlgmr.msrb.gmra.mxu0 %vm418_vm10, %v405_v45 }
 0x1fa   :  { %755 = vmatmul.msk.bf16.vlgmr.msrb.gmra.mxu3 %vm418_vm10, %v405_v45 }
 0x26d   :  { %v323_v48 = vpop.f32.mrf.mxu3 }
 0x26e   :  { %v327_v49 = vmul.f32 %v323_v48, %v279_v11 }
 0x270   :  { %v331_v53 = vmul.f32 %v838_v47, %v327_v49 }
 0x272   :  { %v335_v54 = vadd.f32 %v839_v50, %v331_v53  ;;  %v456_v12 = vpop.f32.mrf.mxu0  ;;  %v822_v53 = vld [vmem:[%s1403_s16 + $0x10] sm:$0xff] }
 0x273   :  { %v457_v25 = vadd.f32 %v841_v21, %v456_v12  ;;  %692 = vmatpush.bf16.msrb.mxu1 %v822_v53 }
 0x274   :  { %v740_v55 = vmul.f32 -1.442695, %v335_v54 }
 0x275   :  { %v325_v57 = vpop.f32.mrf.mxu3 }
 0x276   :  { %852 = vpow2.f32 %v740_v55  ;;  %v843_v55 = vld [vmem:[%s1401_s14] ss:$0 sm:$0xff] }
 0x27a   :  { %v458_v15 = vpop.f32.mrf.mxu0 }
 0x27c   :  { %v853_v59 = vpop.eup %852 }
 0x27d   :  { %v339_v60 = vadd.f32 1.0, %v853_v59  ;;  %v431_v11 = vpop.f32.mrf.mxu3  ;;  %v820_v59 = vld [vmem:[%s1403_s16] sm:$0xff] }
 0x27e   :  { %v432_v20 = vadd.f32 %v840_v19, %v431_v11 }
 0x27f   :  { %854 = vrcp.f32 %v339_v60  ;;  %v351_v0 = vand.u32 2147483648, %v339_v60  ;;  %v349_v2 = vand.u32 2147483647, %v339_v60  ;;  %vm345_vm12 = vweird.f32 %v339_v60 }
 0x280   :  { %v497_v23 = vadd.f32 1.0, %v432_v20 }
 0x281   :  { %v352_v5 = vor.u32 1.1754944e-38, %v351_v0  ;;  %vm350_vm14 = vcmp.eq.f32.partialorder %v349_v2, 8.507059e+37 }
 0x285   :  { %v855_v61 = vpop.eup %854  ;;  %v433_v13 = vpop.f32.mrf.mxu3 }
 0x286   :  { %v341_v62 = vmul.f32 %v855_v61, %v339_v60  ;;  %vm346_vm11 = vweird.f32 %v855_v61 }
 0x287   :  { %vm347_vm13 = vmor %vm345_vm12, %vm346_vm11 }
 0x288   :  { %v342_v63 = vsub.f32 1.0, %v341_v62 }
 0x28a   :  { %v343_v1 = vmul.f32 %v855_v61, %v342_v63 }
 0x28c   :  { %v344_v4 = vadd.f32 %v855_v61, %v343_v1 }
 0x28e   :  { %v348_v6 = vsel %vm347_vm13, %v855_v61, %v344_v4 }
 0x28f   :  { %v353_v7 = vsel %vm350_vm14, %v352_v5, %v348_v6 }
 0x290   :  { %v355_v8 = vmul.f32 %v353_v7, %v335_v54  ;;  %v821_v54 = vld [vmem:[%s1403_s16 + $0x8] sm:$0xff]  ;;  %s1177_s16 = smov [#allocation20]  }
 0x291   :  { %693 = vmatpush.bf16.msrb.mxu1 %v821_v54  ;;  %s711_s2 = sshll.u32 %s1177_s16, 4  ;;  %s712_s2 = int_to_ptr.vmem [resolvable:$true] %s711_s2 }
 0x292   :  { %v460_v9 = vpack.c.bf16 %v355_v8, %v355_v8 }
 0x294   :  { %769 = vmatmul.msk.bf16.vlgmr.msrb.gmra.mxu2 %vm239_vm0, %v460_v9 }
 0x295   :  { %694 = vmatpush.bf16.msrb.mxu1 %v820_v59 }
 0x317   :  { %v493_v24 = vpop.f32.mrf.mxu2 }
 0x318   :  { %v494_v26 = vadd.f32 %v842_v22, %v493_v24 }
 0x31a   :  { %v498_v27 = vmul.f32 %v497_v23, %v494_v26 }
 0x31c   :  { %v499_v28 = vadd.f32 %v498_v27, %v457_v25 }
 0x31e   :  { %v511_v29 = vpack.c.bf16 %v499_v28, %v499_v28 }
 0x31f   :  { %v495_v30 = vpop.f32.mrf.mxu2 }
 0x320   :  { %786 = vmatmul.msk.bf16.vlgmr.msra.gmra.mxu1 %vm536_vm15, %v511_v29 }
 0x39d   :  { %v549_v31 = vpop.f32.mrf.mxu1 }
 0x39e   :  { %v553_v32 = vmul.f32 0.125, %v549_v31 }
 0x3a0   :  { %v554_v33 = vpack.c.bf16 %v553_v32, %v553_v32 }
 0x3a2   :  { %787 = vmatmul.msk.bf16.vlgmr.msra.gmra.mxu3 %vm258_vm2, %v554_v33 }
 0x3a5   :  { %v551_v34 = vpop.f32.mrf.mxu1 }
 0x425   :  { %v570_v35 = vpop.f32.mrf.mxu3 }
 0x426   :  { %v574_v36 = vsub.f32 %v499_v28, %v570_v35 }
 0x428   :  { %v575_v37 = vmul.f32 %v574_v36, %v574_v36 }
 0x42a   :  { %v576_v38 = vpack.c.bf16 %v575_v37, %v575_v37 }
 0x42c   :  { %788 = vmatmul.msk.bf16.vlgmr.msra.gmra.mxu0 %vm536_vm15, %v576_v38 }
 0x42d   :  { %v572_v39 = vpop.f32.mrf.mxu3 }
 0x4a9   :  { %v589_v40 = vpop.f32.mrf.mxu0 }
 0x4aa   :  { %v593_v41 = vmul.f32 0.125, %v589_v40 }
 0x4ac   :  { %v594_v42 = vadd.f32 1e-05, %v593_v41 }
 0x4ae   :  { %856 = vrsqrt.f32 %v594_v42  ;;  %vm601_vm1 = vweird.f32 %v594_v42 }
 0x4b1   :  { %v591_v43 = vpop.f32.mrf.mxu0 }
 0x4b4   :  { %v857_v44 = vpop.eup %856 }
 0x4b5   :  { %v596_v45 = vmul.f32 %v857_v44, %v594_v42  ;;  %vm602_vm0 = vweird.f32 %v857_v44 }
 0x4b6   :  { %vm603_vm3 = vmor %vm601_vm1, %vm602_vm0 }
 0x4b7   :  { %v597_v46 = vmul.f32 %v857_v44, %v596_v45 }
 0x4b9   :  { %v598_v47 = vmul.f32 0.5, %v597_v46 }
 0x4bb   :  { %v599_v48 = vsub.f32 1.5, %v598_v47 }
 0x4bd   :  { %v600_v49 = vmul.f32 %v857_v44, %v599_v48 }
 0x4bf   :  { %v604_v50 = vsel %vm603_vm3, %v857_v44, %v600_v49 }
 0x4c0   :  { %v605_v51 = vpack.c.bf16 %v604_v50, %v604_v50 }
 0x4c2   :  { %789 = vmatmul.msk.bf16.vlgmr.msra.gmra.mxu2 %vm258_vm2, %v605_v51 }
 0x545   :  { %v618_v56 = vpop.f32.mrf.mxu2 }
 0x546   :  { %v622_v57 = vmul.f32 %v618_v56, %v574_v36 }
 0x548   :  { %v626_v60 = vmul.f32 %v843_v55, %v622_v57 }
 0x54a   :  { %v630_v61 = vadd.f32 %v844_v58, %v626_v60 }
 0x54c   :  { %v790_v62 = vmul.f32 -1.442695, %v630_v61 }
 0x54d   :  { %v620_v63 = vpop.f32.mrf.mxu2 }
 0x54e   :  { %858 = vpow2.f32 %v790_v62 }
 0x554   :  { %v859_v0 = vpop.eup %858 }
 0x555   :  { %v634_v1 = vadd.f32 1.0, %v859_v0 }
 0x557   :  { %860 = vrcp.f32 %v634_v1  ;;  %v646_v6 = vand.u32 2147483648, %v634_v1  ;;  %v644_v8 = vand.u32 2147483647, %v634_v1  ;;  %vm640_vm4 = vweird.f32 %v634_v1 }
 0x559   :  { %v647_v3 = vor.u32 1.1754944e-38, %v646_v6  ;;  %vm645_vm6 = vcmp.eq.f32.partialorder %v644_v8, 8.507059e+37 }
 0x55d   :  { %v861_v2 = vpop.eup %860 }
 0x55e   :  { %v636_v4 = vmul.f32 %v861_v2, %v634_v1  ;;  %vm641_vm2 = vweird.f32 %v861_v2 }
 0x55f   :  { %vm642_vm5 = vmor %vm640_vm4, %vm641_vm2 }
 0x560   :  { %v637_v5 = vsub.f32 1.0, %v636_v4 }
 0x562   :  { %v638_v7 = vmul.f32 %v861_v2, %v637_v5 }
 0x564   :  { %v639_v9 = vadd.f32 %v861_v2, %v638_v7 }
 0x566   :  { %v643_v10 = vsel %vm642_vm5, %v861_v2, %v639_v9 }
 0x567   :  { %v648_v11 = vsel %vm645_vm6, %v647_v3, %v643_v10 }
 0x568   :  { %v650_v12 = vmul.f32 %v648_v11, %v630_v61 }
 0x56a   :  { %v651_v13 = vpack.c.bf16 %v650_v12, %v650_v12 }
 0x56c   :  { %807 = vmatmul.msk.bf16.vlgmr.msrb.gmra.mxu1 %vm536_vm15, %v651_v13 }
 0x5e9   :  { %v696_v15 = vpop.f32.mrf.mxu1 }
 0x5ea   :  { %v697_v16 = vadd.f32 %v696_v15, %v1355_v17 }
 0x5ec   :  { %v704_v18 = vadd.f32 %v845_v14, %v697_v16 }
 0x5ee   :  { %705 = vst [vmem:[#allocation20] sm:$0xff] %v704_v18 }
 0x5ef   :  { %716 = dma.vmem_to_hbm [thread:$0]  %s712_s2, 128, %s714_s10, [#allocation4]  }
 0x5f1   :  { %v698_v19 = vpop.f32.mrf.mxu1 }
 0x5f2   :  { %1162 = dma.done.wait [#allocation4], 128  }
 0x5f3   :  { %1163 = vsyncadd [#allocation4], 4294967168 }
 0x5f4   :  { %721 = vsyncpa [#allocation3], 1 }
 0x5f5   :  { %722 = vsyncpa [#allocation6], 1 }
 0x5f6   :  { %723 = vsyncpa [#allocation9], 1 }
 0x5f7   :  { %724 = vsyncpa [#allocation12], 1 }
 0x5f8   :  { %725 = vsyncpa [#allocation15], 1 }
 0x5f9   :  { %726 = vsyncpa [#allocation18], 1 }
 0x5fa   :  { %727 = vsyncpa [#allocation4], 1 }

// kernel: tpu_custom_call.1
= control target key start
LH: loop header
LB: loop body
LE: loop exit
PB: predicated region body
PF: predicated region fallthrough
CT: control target
= control target key end

     0   :  { %s1387_s0 = inlined_call_operand.hbm [shape: f32[8,32], index: 0, kind: input, shape index: {}]   ;;  %s1388_s1 = inlined_call_operand.hbm [shape: f32[8,16], index: 1, kind: input, shape index: {}]   ;;  %s1389_s2 = inlined_call_operand.vmem [shape: bf16[32,8], index: 2, kind: input, shape index: {}]   ;;  %s1390_s3 = inlined_call_operand.hbm [shape: bf16[8,32], index: 3, kind: input, shape index: {}]   ;;  %s1391_s4 = inlined_call_operand.vmem [shape: bf16[64,8], index: 4, kind: input, shape index: {}]   ;;  %s1392_s5 = inlined_call_operand.hbm [shape: bf16[8,64], index: 5, kind: input, shape index: {}]   ;;  %s1393_s6 = inlined_call_operand.hbm [shape: f32[1,32], index: 6, kind: input, shape index: {}]   ;;  %s1394_s7 = inlined_call_operand.hbm [shape: f32[1,32], index: 7, kind: input, shape index: {}]   ;;  %s1395_s8 = inlined_call_operand.vmem [shape: bf16[32,64], index: 8, kind: input, shape index: {}]   ;;  %s1396_s9 = inlined_call_operand.hbm [shape: f32[1,64], index: 9, kind: input, shape index: {}]   ;;  %s1397_s10 = inlined_call_operand.hbm [shape: bf16[16,64], index: 10, kind: input, shape index: {}]   ;;  %s1398_s11 = inlined_call_operand.hbm [shape: f32[1,64], index: 11, kind: input, shape index: {}]   ;;  %s1399_s12 = inlined_call_operand.hbm [shape: bf16[16,64], index: 12, kind: input, shape index: {}]   ;;  %s1400_s13 = inlined_call_operand.hbm [shape: f32[1,64], index: 13, kind: input, shape index: {}]   ;;  %s1401_s14 = inlined_call_operand.vmem [shape: f32[1,64], index: 14, kind: input, shape index: {}]   ;;  %s1402_s15 = inlined_call_operand.vmem [shape: f32[1,64], index: 15, kind: input, shape index: {}]   ;;  %s1403_s16 = inlined_call_operand.vmem [shape: bf16[64,128], index: 16, kind: input, shape index: {}]   ;;  %s1404_s17 = inlined_call_operand.vmem [shape: f32[1,128], index: 17, kind: input, shape index: {}]   ;;  %s1405_s18 = inlined_call_operand.vmem [shape: bf16[32,128], index: 18, kind: input, shape index: {}]   ;;  %s1406_s19 = inlined_call_operand.hbm [shape: f32[8,128], index: 19, kind: output, shape index: {}]  }
   0x1   :  { %1408 = sst [smem:[#allocation28_spill]] %s1387_s0 }
   0x2   :  { %1409 = sst [smem:[#allocation29_spill]] %s1388_s1 }
   0x3   :  { %1410 = sst [smem:[#allocation30_spill]] %s1389_s2 }
   0x4   :  { %1411 = sst [smem:[#allocation31_spill]] %s1390_s3 }
   0x5   :  { %24 = vsyncpa [#allocation3], 0 }
   0x6   :  { %25 = vsyncpa [#allocation6], 0 }
   0x7   :  { %26 = vsyncpa [#allocation9], 0 }
   0x8   :  { %27 = vsyncpa [#allocation12], 0 }
   0x9   :  { %28 = vsyncpa [#allocation15], 0 }
   0xa   :  { %29 = vsyncpa [#allocation18], 0  ;;  %s1412_s20 = sld [smem:[#allocation29_spill]] }
  0x10   :  { %s47_s21 = sshll.u32 %s1412_s20, 4  ;;  %s48_s21 = int_to_ptr.hbm [resolvable:$true] %s47_s21 }
  0x11   :  { %30 = vsyncpa [#allocation4], 0  ;;  %s1164_s1 = smov [#allocation5]   ;;  %s73_s24 = sshll.u32 %s1392_s5, 4  ;;  %s74_s24 = int_to_ptr.hbm [resolvable:$true] %s73_s24 }
  0x12   :  { %s49_s22 = sshll.u32 %s1164_s1, 4  ;;  %s1165_s25 = smov [#allocation8]   ;;  %s50_s22 = int_to_ptr.vmem [resolvable:$true] %s49_s22 }
  0x13   :  { %52 = dma.hbm_to_vmem [thread:$0]  %s48_s21, 128, %s50_s22, [#allocation6]  }
  0x14   :  { %s75_s3 = sshll.u32 %s1165_s25, 4  ;;  %s95_s28 = sshll.u32 %s1394_s7, 4  ;;  %s76_s3 = int_to_ptr.vmem [resolvable:$true] %s75_s3  ;;  %s96_s28 = int_to_ptr.hbm [resolvable:$true] %s95_s28 }
  0x15   :  { %78 = dma.hbm_to_vmem [thread:$0]  %s74_s24, 64, %s76_s3, [#allocation9]  }
  0x16   :  { %s118_s30 = sshll.u32 %s1397_s10, 4  ;;  %s1166_s20 = smov [#allocation11]   ;;  %s119_s30 = int_to_ptr.hbm [resolvable:$true] %s118_s30 }
  0x17   :  { %s97_s1 = sshll.u32 %s1166_s20, 4  ;;  %s1167_s5 = smov [#allocation14]   ;;  %s98_s1 = int_to_ptr.vmem [resolvable:$true] %s97_s1 }
  0x18   :  { %100 = dma.hbm_to_vmem [thread:$0]  %s96_s28, 16, %s98_s1, [#allocation12]  }
  0x19   :  { %s120_s21 = sshll.u32 %s1167_s5, 4  ;;  %s1168_s22 = smov 64   ;;  %s121_s21 = int_to_ptr.vmem [resolvable:$true] %s120_s21 }
  0x1a   :  { %s1169_s2 = smov 4   ;;  %s142_s25 = sshll.u32 %s1399_s12, 4  ;;  %s143_s25 = int_to_ptr.hbm [resolvable:$true] %s142_s25 }
  0x1b   :  { %126 = dma.hbm_to_vmem [thread:$0]  %s119_s30, 128, %s121_s21, [#allocation15], %s1168_s22, %s1168_s22, %s1169_s2  }
  0x1c   :  { %s1170_s24 = smov [#allocation17]   ;;  %s1413_s27 = sld [smem:[#allocation28_spill]] }
  0x1d   :  { %s144_s3 = sshll.u32 %s1170_s24, 4  ;;  %s1171_s28 = smov [#allocation2]   ;;  %s145_s3 = int_to_ptr.vmem [resolvable:$true] %s144_s3 }
  0x1e   :  { %150 = dma.hbm_to_vmem [thread:$0]  %s143_s25, 128, %s145_s3, [#allocation18], %s1168_s22, %s1168_s22, %s1169_s2  }
  0x1f   :  { %s38_s0 = sshll.u32 %s1171_s28, 4  ;;  %s1414_s5 = sld [smem:[#allocation31_spill]]  ;;  %s39_s0 = int_to_ptr.vmem [resolvable:$true] %s38_s0 }
  0x20   :  { %s84_s23 = sshll.u32 %s1393_s6, 4  ;;  %s1172_s7 = smov [#allocation7]   ;;  %s85_s23 = int_to_ptr.hbm [resolvable:$true] %s84_s23 }
  0x21   :  { %s62_s24 = sshll.u32 %s1172_s7, 4  ;;  %s1173_s22 = smov [#allocation10]   ;;  %s63_s24 = int_to_ptr.vmem [resolvable:$true] %s62_s24 }
  0x22   :  { %s36_s29 = sshll.u32 %s1413_s27, 4  ;;  %s86_s2 = sshll.u32 %s1173_s22, 4  ;;  %s37_s29 = int_to_ptr.hbm [resolvable:$true] %s36_s29  ;;  %s87_s2 = int_to_ptr.vmem [resolvable:$true] %s86_s2 }
  0x23   :  { %41 = dma.hbm_to_vmem [thread:$0]  %s37_s29, 128, %s39_s0, [#allocation3]  }
  0x24   :  { %s108_s10 = sshll.u32 %s1396_s9, 4  ;;  %s132_s29 = sshll.u32 %s1398_s11, 4  ;;  %s109_s10 = int_to_ptr.hbm [resolvable:$true] %s108_s10  ;;  %s133_s29 = int_to_ptr.hbm [resolvable:$true] %s132_s29 }
  0x25   :  { %s60_s30 = sshll.u32 %s1414_s5, 4  ;;  %s1174_s28 = smov [#allocation13]   ;;  %s61_s30 = int_to_ptr.hbm [resolvable:$true] %s60_s30 }
  0x26   :  { %65 = dma.hbm_to_vmem [thread:$0]  %s61_s30, 64, %s63_s24, [#allocation6]  }
  0x27   :  { %89 = dma.hbm_to_vmem [thread:$0]  %s85_s23, 16, %s87_s2, [#allocation9]  }
  0x28   :  { %s110_s6 = sshll.u32 %s1174_s28, 4  ;;  %s1175_s0 = smov [#allocation16]   ;;  %s111_s6 = int_to_ptr.vmem [resolvable:$true] %s110_s6 }
  0x29   :  { %113 = dma.hbm_to_vmem [thread:$0]  %s109_s10, 16, %s111_s6, [#allocation12]  }
  0x2a   :  { %s134_s20 = sshll.u32 %s1175_s0, 4  ;;  %s156_s30 = sshll.u32 %s1400_s13, 4  ;;  %s135_s20 = int_to_ptr.vmem [resolvable:$true] %s134_s20  ;;  %s157_s30 = int_to_ptr.hbm [resolvable:$true] %s156_s30 }
  0x2b   :  { %137 = dma.hbm_to_vmem [thread:$0]  %s133_s29, 16, %s135_s20, [#allocation15]  }
  0x2c   :  { %s1176_s9 = smov [#allocation19]  }
  0x2d   :  { %s158_s12 = sshll.u32 %s1176_s9, 4  ;;  %s159_s12 = int_to_ptr.vmem [resolvable:$true] %s158_s12 }
  0x2e   :  { %161 = dma.hbm_to_vmem [thread:$0]  %s157_s30, 16, %s159_s12, [#allocation18]  }
  0x2f   :  { %1150 = dma.done.wait [#allocation3], 128  }
  0x30   :  { %1151 = vsyncadd [#allocation3], 4294967168 }
  0x31   :  { %1152 = dma.done.wait [#allocation6], 192  }
  0x32   :  { %1153 = vsyncadd [#allocation6], 4294967104 }
  0x33   :  { %1154 = dma.done.wait [#allocation9], 80  }
  0x34   :  { %1155 = vsyncadd [#allocation9], 4294967216 }
  0x35   :  { %1156 = dma.done.wait [#allocation12], 32  }
  0x36   :  { %1157 = vsyncadd [#allocation12], 4294967264 }
  0x37   :  { %1158 = dma.done.wait [#allocation15], 144  }
  0x38   :  { %1159 = vsyncadd [#allocation15], 4294967152 }
  0x39   :  { %1160 = dma.done.wait [#allocation18], 144  }
  0x3a   :  { %1161 = vsyncadd [#allocation18], 4294967152  ;;  %s1415_s21 = sld [smem:[#allocation30_spill]]  ;;  %v217_v2 = vld [vmem:[#allocation2] sm:$0xff]  ;;  %vm239_vm0 = vcmask 261120   ;;  %vm262_vm1 = vcmask 1043456  }
  0x3b   :  { %v1317_v3 = vpack.c.bf16 %v217_v2, %v217_v2  ;;  %v225_v4 = vld [vmem:[#allocation7] sm:$0xf]  ;;  %vm258_vm2 = vcmask 64512   ;;  %v218_v27 = vld [vmem:[#allocation5] sm:$0xff]  ;;  %v510_v36 = vld [vmem:[#allocation8] sm:$0xf] }
  0x3c   :  { %v264_v5 = vsel %vm262_vm1, %v225_v4, 0  ;;  %v750_v28 = vmul.f32 -1.442695, %v218_v27  ;;  %v559_v41 = vsel %vm262_vm1, %v510_v36, 0  ;;  %v812_v42 = vld [vmem:[#allocation14] sm:$0xff]  ;;  %vm418_vm10 = vcmask 130048  }
  0x3d   :  { %273 = vmatpush.bf16.msra.mxu1 %v264_v5  ;;  %321 = vmatpush.bf16.msra.mxu3 %v264_v5  ;;  %v815_v46 = vld [vmem:[%s1395_s8 + $0x8] sm:$0xff]  ;;  %v838_v47 = vld [vmem:[#allocation10] ss:$0 sm:$0xff]  ;;  %v839_v50 = vld [vmem:[#allocation11] ss:$0 sm:$0xff]  ;;  %vm536_vm15 = vcmask 523264  }
  0x3e   :  { %v813_v51 = vld [vmem:[#allocation17] sm:$0xff]  ;;  %v814_v52 = vld [vmem:[%s1395_s8] sm:$0xff]  ;;  %s713_s10 = sshll.u32 %s1406_s19, 4  ;;  %s714_s10 = int_to_ptr.hbm [resolvable:$true] %s713_s10 }
  0x3f   :  { %v811_v56 = vld [vmem:[%s1405_s18 + $0x8] sm:$0xff]  ;;  %v810_v58 = vld [vmem:[%s1405_s18] sm:$0xff] }
  0x40   :  { %v809_v0 = vld [vmem:[%s1415_s21 + $0x8] sm:$0xff]  ;;  %v808_v1 = vld [vmem:[%s1415_s21] sm:$0xff] }
  0x41   :  { %249 = vmatpush.bf16.msra.mxu0 %v809_v0  ;;  %291 = vmatpush.bf16.msra.mxu2 %v809_v0 }
  0x42   :  { %429 = vmatpush.bf16.msrb.mxu3 %v812_v42  ;;  %378 = vmatpush.bf16.msrb.mxu1 %v811_v56 }
  0x45   :  { %250 = vmatpush.bf16.msra.mxu0 %v808_v1  ;;  %292 = vmatpush.bf16.msra.mxu2 %v808_v1 }
  0x46   :  { %379 = vmatpush.bf16.msrb.mxu1 %v810_v58  ;;  %v844_v58 = vld [vmem:[%s1402_s15] ss:$0 sm:$0xff] }
  0x48   :  { %736 = vmatmul.msk.bf16.vlgmr.msra.gmra.mxu0 %vm239_vm0, %v1317_v3 }
  0x49   :  { %490 = vmatpush.bf16.msrb.mxu2 %v815_v46  ;;  %454 = vmatpush.bf16.msrb.mxu0 %v813_v51 }
  0x4d   :  { %491 = vmatpush.bf16.msrb.mxu2 %v814_v52  ;;  %v823_v52 = vld [vmem:[%s1403_s16 + $0x18] sm:$0xff] }
  0xc5   :  { %v252_v6 = vpop.f32.mrf.mxu0 }
  0xc6   :  { %v256_v7 = vmul.f32 0.25, %v252_v6 }
  0xc8   :  { %v257_v8 = vpack.c.bf16 %v256_v7, %v256_v7 }
  0xca   :  { %737 = vmatmul.msk.bf16.vlgmr.msra.gmra.mxu1 %vm258_vm2, %v257_v8 }
  0xcd   :  { %v254_v9 = vpop.f32.mrf.mxu0 }
  0xda   :  { %749 = vmatmul.msk.bf16.vlgmr.msrb.gmra.mxu1 %vm239_vm0, %v1317_v3  ;;  %v819_v3 = vld [vmem:[%s1391_s4 + $0x18] sm:$0xff] }
  0xdb   :  { %544 = vmatpush.bf16.msra.mxu1 %v819_v3  ;;  %584 = vmatpush.bf16.msra.mxu0 %v819_v3 }
 0x147   :  { %v275_v10 = vpop.f32.mrf.mxu1 }
 0x148   :  { %v279_v11 = vsub.f32 %v217_v2, %v275_v10  ;;  %v818_v10 = vld [vmem:[%s1391_s4 + $0x10] sm:$0xff] }
 0x149   :  { %545 = vmatpush.bf16.msra.mxu1 %v818_v10  ;;  %585 = vmatpush.bf16.msra.mxu0 %v818_v10 }
 0x14a   :  { %v280_v12 = vmul.f32 %v279_v11, %v279_v11 }
 0x14c   :  { %v281_v13 = vpack.c.bf16 %v280_v12, %v280_v12 }
 0x14e   :  { %738 = vmatmul.msk.bf16.vlgmr.msra.gmra.mxu2 %vm239_vm0, %v281_v13 }
 0x14f   :  { %v277_v14 = vpop.f32.mrf.mxu1  ;;  %616 = vmatpush.bf16.msra.mxu2 %v559_v41 }
 0x150   :  { %v817_v14 = vld [vmem:[%s1391_s4 + $0x8] sm:$0xff] }
 0x151   :  { %546 = vmatpush.bf16.msra.mxu1 %v817_v14  ;;  %586 = vmatpush.bf16.msra.mxu0 %v817_v14  ;;  %v845_v14 = vld [vmem:[%s1404_s17] ss:$0 sm:$0xff] }
 0x1d1   :  { %v294_v15 = vpop.f32.mrf.mxu2 }
 0x1d2   :  { %v298_v16 = vmul.f32 0.25, %v294_v15 }
 0x1d4   :  { %v299_v17 = vadd.f32 1e-05, %v298_v16  ;;  %v816_v16 = vld [vmem:[%s1391_s4] sm:$0xff] }
 0x1d5   :  { %547 = vmatpush.bf16.msra.mxu1 %v816_v16  ;;  %587 = vmatpush.bf16.msra.mxu0 %v816_v16 }
 0x1d6   :  { %846 = vrsqrt.f32 %v299_v17  ;;  %vm306_vm4 = vweird.f32 %v299_v17 }
 0x1d7   :  { %848 = vpow2.f32 %v750_v28 }
 0x1d9   :  { %v296_v18 = vpop.f32.mrf.mxu2  ;;  %691 = vmatpush.bf16.msrb.mxu1 %v823_v52 }
 0x1dc   :  { %v847_v19 = vpop.eup %846 }
 0x1dd   :  { %v301_v20 = vmul.f32 %v847_v19, %v299_v17  ;;  %vm307_vm3 = vweird.f32 %v847_v19  ;;  %v849_v29 = vpop.eup %848  ;;  %v1355_v17 = vpop.f32.mrf.mxu1 }
 0x1de   :  { %vm308_vm5 = vmor %vm306_vm4, %vm307_vm3  ;;  %v388_v30 = vadd.f32 1.0, %v849_v29 }
 0x1df   :  { %v302_v21 = vmul.f32 %v847_v19, %v301_v20 }
 0x1e0   :  { %850 = vrcp.f32 %v388_v30  ;;  %v400_v35 = vand.u32 2147483648, %v388_v30  ;;  %vm394_vm6 = vweird.f32 %v388_v30  ;;  %v398_v38 = vand.u32 2147483647, %v388_v30 }
 0x1e1   :  { %v303_v22 = vmul.f32 0.5, %v302_v21  ;;  %v841_v21 = vld [vmem:[#allocation19] ss:$0 sm:$0xff] }
 0x1e2   :  { %v401_v39 = vor.u32 1.1754944e-38, %v400_v35  ;;  %vm399_vm9 = vcmp.eq.f32.partialorder %v398_v38, 8.507059e+37 }
 0x1e3   :  { %v304_v23 = vsub.f32 1.5, %v303_v22  ;;  %v842_v22 = vld [vmem:[#allocation13] ss:$0 sm:$0xff] }
 0x1e5   :  { %v305_v24 = vmul.f32 %v847_v19, %v304_v23  ;;  %v383_v18 = vpop.f32.mrf.mxu1 }
 0x1e6   :  { %v851_v31 = vpop.eup %850 }
 0x1e7   :  { %v309_v25 = vsel %vm308_vm5, %v847_v19, %v305_v24  ;;  %v390_v32 = vmul.f32 %v851_v31, %v388_v30  ;;  %vm395_vm7 = vweird.f32 %v851_v31  ;;  %v840_v19 = vld [vmem:[#allocation16] ss:$0 sm:$0xff] }
 0x1e8   :  { %v310_v26 = vpack.c.bf16 %v309_v25, %v309_v25  ;;  %vm396_vm8 = vmor %vm394_vm6, %vm395_vm7 }
 0x1e9   :  { %v391_v33 = vsub.f32 1.0, %v390_v32 }
 0x1ea   :  { %739 = vmatmul.msk.bf16.vlgmr.msra.gmra.mxu3 %vm258_vm2, %v310_v26 }
 0x1eb   :  { %v392_v34 = vmul.f32 %v851_v31, %v391_v33  ;;  %568 = vmatpush.bf16.msra.mxu3 %v559_v41 }
 0x1ed   :  { %v393_v37 = vadd.f32 %v851_v31, %v392_v34 }
 0x1ef   :  { %v397_v40 = vsel %vm396_vm8, %v851_v31, %v393_v37 }
 0x1f0   :  { %v402_v43 = vsel %vm399_vm9, %v401_v39, %v397_v40 }
 0x1f1   :  { %v404_v44 = vmul.f32 %v402_v43, %v218_v27 }
 0x1f3   :  { %v405_v45 = vpack.c.bf16 %v404_v44, %v404_v44 }
 0x1f5   :  { %760 = vmatmul.msk.bf16.vlgmr.msrb.gmra.mxu0 %vm418_vm10, %v405_v45 }
 0x1fa   :  { %755 = vmatmul.msk.bf16.vlgmr.msrb.gmra.mxu3 %vm418_vm10, %v405_v45 }
 0x26d   :  { %v323_v48 = vpop.f32.mrf.mxu3 }
 0x26e   :  { %v327_v49 = vmul.f32 %v323_v48, %v279_v11 }
 0x270   :  { %v331_v53 = vmul.f32 %v838_v47, %v327_v49 }
 0x272   :  { %v335_v54 = vadd.f32 %v839_v50, %v331_v53  ;;  %v456_v12 = vpop.f32.mrf.mxu0  ;;  %v822_v53 = vld [vmem:[%s1403_s16 + $0x10] sm:$0xff] }
 0x273   :  { %v457_v25 = vadd.f32 %v841_v21, %v456_v12  ;;  %692 = vmatpush.bf16.msrb.mxu1 %v822_v53 }
 0x274   :  { %v740_v55 = vmul.f32 -1.442695, %v335_v54 }
 0x275   :  { %v325_v57 = vpop.f32.mrf.mxu3 }
 0x276   :  { %852 = vpow2.f32 %v740_v55  ;;  %v843_v55 = vld [vmem:[%s1401_s14] ss:$0 sm:$0xff] }
 0x27a   :  { %v458_v15 = vpop.f32.mrf.mxu0 }
 0x27c   :  { %v853_v59 = vpop.eup %852 }
 0x27d   :  { %v339_v60 = vadd.f32 1.0, %v853_v59  ;;  %v431_v11 = vpop.f32.mrf.mxu3  ;;  %v820_v59 = vld [vmem:[%s1403_s16] sm:$0xff] }
 0x27e   :  { %v432_v20 = vadd.f32 %v840_v19, %v431_v11 }
 0x27f   :  { %854 = vrcp.f32 %v339_v60  ;;  %v351_v0 = vand.u32 2147483648, %v339_v60  ;;  %v349_v2 = vand.u32 2147483647, %v339_v60  ;;  %vm345_vm12 = vweird.f32 %v339_v60 }
 0x280   :  { %v497_v23 = vadd.f32 1.0, %v432_v20 }
 0x281   :  { %v352_v5 = vor.u32 1.1754944e-38, %v351_v0  ;;  %vm350_vm14 = vcmp.eq.f32.partialorder %v349_v2, 8.507059e+37 }
 0x285   :  { %v855_v61 = vpop.eup %854  ;;  %v433_v13 = vpop.f32.mrf.mxu3 }
 0x286   :  { %v341_v62 = vmul.f32 %v855_v61, %v339_v60  ;;  %vm346_vm11 = vweird.f32 %v855_v61 }
 0x287   :  { %vm347_vm13 = vmor %vm345_vm12, %vm346_vm11 }
 0x288   :  { %v342_v63 = vsub.f32 1.0, %v341_v62 }
 0x28a   :  { %v343_v1 = vmul.f32 %v855_v61, %v342_v63 }
 0x28c   :  { %v344_v4 = vadd.f32 %v855_v61, %v343_v1 }
 0x28e   :  { %v348_v6 = vsel %vm347_vm13, %v855_v61, %v344_v4 }
 0x28f   :  { %v353_v7 = vsel %vm350_vm14, %v352_v5, %v348_v6 }
 0x290   :  { %v355_v8 = vmul.f32 %v353_v7, %v335_v54  ;;  %v821_v54 = vld [vmem:[%s1403_s16 + $0x8] sm:$0xff]  ;;  %s1177_s16 = smov [#allocation20]  }
 0x291   :  { %693 = vmatpush.bf16.msrb.mxu1 %v821_v54  ;;  %s711_s2 = sshll.u32 %s1177_s16, 4  ;;  %s712_s2 = int_to_ptr.vmem [resolvable:$true] %s711_s2 }
 0x292   :  { %v460_v9 = vpack.c.bf16 %v355_v8, %v355_v8 }
 0x294   :  { %769 = vmatmul.msk.bf16.vlgmr.msrb.gmra.mxu2 %vm239_vm0, %v460_v9 }
 0x295   :  { %694 = vmatpush.bf16.msrb.mxu1 %v820_v59 }
 0x317   :  { %v493_v24 = vpop.f32.mrf.mxu2 }
 0x318   :  { %v494_v26 = vadd.f32 %v842_v22, %v493_v24 }
 0x31a   :  { %v498_v27 = vmul.f32 %v497_v23, %v494_v26 }
 0x31c   :  { %v499_v28 = vadd.f32 %v498_v27, %v457_v25 }
 0x31e   :  { %v511_v29 = vpack.c.bf16 %v499_v28, %v499_v28 }
 0x31f   :  { %v495_v30 = vpop.f32.mrf.mxu2 }
 0x320   :  { %786 = vmatmul.msk.bf16.vlgmr.msra.gmra.mxu1 %vm536_vm15, %v511_v29 }
 0x39d   :  { %v549_v31 = vpop.f32.mrf.mxu1 }
 0x39e   :  { %v553_v32 = vmul.f32 0.125, %v549_v31 }
 0x3a0   :  { %v554_v33 = vpack.c.bf16 %v553_v32, %v553_v32 }
 0x3a2   :  { %787 = vmatmul.msk.bf16.vlgmr.msra.gmra.mxu3 %vm258_vm2, %v554_v33 }
 0x3a5   :  { %v551_v34 = vpop.f32.mrf.mxu1 }
 0x425   :  { %v570_v35 = vpop.f32.mrf.mxu3 }
 0x426   :  { %v574_v36 = vsub.f32 %v499_v28, %v570_v35 }
 0x428   :  { %v575_v37 = vmul.f32 %v574_v36, %v574_v36 }
 0x42a   :  { %v576_v38 = vpack.c.bf16 %v575_v37, %v575_v37 }
 0x42c   :  { %788 = vmatmul.msk.bf16.vlgmr.msra.gmra.mxu0 %vm536_vm15, %v576_v38 }
 0x42d   :  { %v572_v39 = vpop.f32.mrf.mxu3 }
 0x4a9   :  { %v589_v40 = vpop.f32.mrf.mxu0 }
 0x4aa   :  { %v593_v41 = vmul.f32 0.125, %v589_v40 }
 0x4ac   :  { %v594_v42 = vadd.f32 1e-05, %v593_v41 }
 0x4ae   :  { %856 = vrsqrt.f32 %v594_v42  ;;  %vm601_vm1 = vweird.f32 %v594_v42 }
 0x4b1   :  { %v591_v43 = vpop.f32.mrf.mxu0 }
 0x4b4   :  { %v857_v44 = vpop.eup %856 }
 0x4b5   :  { %v596_v45 = vmul.f32 %v857_v44, %v594_v42  ;;  %vm602_vm0 = vweird.f32 %v857_v44 }
 0x4b6   :  { %vm603_vm3 = vmor %vm601_vm1, %vm602_vm0 }
 0x4b7   :  { %v597_v46 = vmul.f32 %v857_v44, %v596_v45 }
 0x4b9   :  { %v598_v47 = vmul.f32 0.5, %v597_v46 }
 0x4bb   :  { %v599_v48 = vsub.f32 1.5, %v598_v47 }
 0x4bd   :  { %v600_v49 = vmul.f32 %v857_v44, %v599_v48 }
 0x4bf   :  { %v604_v50 = vsel %vm603_vm3, %v857_v44, %v600_v49 }
 0x4c0   :  { %v605_v51 = vpack.c.bf16 %v604_v50, %v604_v50 }
 0x4c2   :  { %789 = vmatmul.msk.bf16.vlgmr.msra.gmra.mxu2 %vm258_vm2, %v605_v51 }
 0x545   :  { %v618_v56 = vpop.f32.mrf.mxu2 }
 0x546   :  { %v622_v57 = vmul.f32 %v618_v56, %v574_v36 }
 0x548   :  { %v626_v60 = vmul.f32 %v843_v55, %v622_v57 }
 0x54a   :  { %v630_v61 = vadd.f32 %v844_v58, %v626_v60 }
 0x54c   :  { %v790_v62 = vmul.f32 -1.442695, %v630_v61 }
 0x54d   :  { %v620_v63 = vpop.f32.mrf.mxu2 }
 0x54e   :  { %858 = vpow2.f32 %v790_v62 }
 0x554   :  { %v859_v0 = vpop.eup %858 }
 0x555   :  { %v634_v1 = vadd.f32 1.0, %v859_v0 }
 0x557   :  { %860 = vrcp.f32 %v634_v1  ;;  %v646_v6 = vand.u32 2147483648, %v634_v1  ;;  %v644_v8 = vand.u32 2147483647, %v634_v1  ;;  %vm640_vm4 = vweird.f32 %v634_v1 }
 0x559   :  { %v647_v3 = vor.u32 1.1754944e-38, %v646_v6  ;;  %vm645_vm6 = vcmp.eq.f32.partialorder %v644_v8, 8.507059e+37 }
 0x55d   :  { %v861_v2 = vpop.eup %860 }
 0x55e   :  { %v636_v4 = vmul.f32 %v861_v2, %v634_v1  ;;  %vm641_vm2 = vweird.f32 %v861_v2 }
 0x55f   :  { %vm642_vm5 = vmor %vm640_vm4, %vm641_vm2 }
 0x560   :  { %v637_v5 = vsub.f32 1.0, %v636_v4 }
 0x562   :  { %v638_v7 = vmul.f32 %v861_v2, %v637_v5 }
 0x564   :  { %v639_v9 = vadd.f32 %v861_v2, %v638_v7 }
 0x566   :  { %v643_v10 = vsel %vm642_vm5, %v861_v2, %v639_v9 }
 0x567   :  { %v648_v11 = vsel %vm645_vm6, %v647_v3, %v643_v10 }
 0x568   :  { %v650_v12 = vmul.f32 %v648_v11, %v630_v61 }
 0x56a   :  { %v651_v13 = vpack.c.bf16 %v650_v12, %v650_v12 }
 0x56c   :  { %807 = vmatmul.msk.bf16.vlgmr.msrb.gmra.mxu1 %vm536_vm15, %v651_v13 }
 0x5e9   :  { %v696_v15 = vpop.f32.mrf.mxu1 }
 0x5ea   :  { %v697_v16 = vadd.f32 %v696_v15, %v1355_v17 }
 0x5ec   :  { %v704_v18 = vadd.f32 %v845_v14, %v697_v16 }
 0x5ee   :  { %705 = vst [vmem:[#allocation20] sm:$0xff] %v704_v18 }
 0x5ef   :  { %716 = dma.vmem_to_hbm [thread:$0]  %s712_s2, 128, %s714_s10, [#allocation4]  }
 0x5f1   :  { %v698_v19 = vpop.f32.mrf.mxu1 }
 0x5f2   :  { %1162 = dma.done.wait [#allocation4], 128  }
 0x5f3   :  { %1163 = vsyncadd [#allocation4], 4294967168 }
 0x5f4   :  { %721 = vsyncpa [#allocation3], 1 }
 0x5f5   :  { %722 = vsyncpa [#allocation6], 1 }
 0x5f6   :  { %723 = vsyncpa [#allocation9], 1 }
 0x5f7   :  { %724 = vsyncpa [#allocation12], 1 }
 0x5f8   :  { %725 = vsyncpa [#allocation15], 1 }
 0x5f9   :  { %726 = vsyncpa [#allocation18], 1 }
 0x5fa   :  { %727 = vsyncpa [#allocation4], 1 }

</bundles_post_ra>
